<compile_context>
chip_gen: v5e
topology: v5e:2x2
jax: 0.10.0
libtpu: 0.0.40
codegen_flags: <defaults>
</compile_context>

<pallas_src>
import functools
import math

import jax
import jax.numpy as jnp
from jax import lax
from jax.experimental import pallas as pl
from jax.experimental.pallas import tpu as pltpu  # noqa: F401  (TPU backend)

# ----- model hyper-parameters (small, consistent with the module) -----
D_MODEL = 32
NHEADS = 4
NUM_HIDDEN = 32        # == d_model (aggregated representation feeds the heads)
NUM_LATENT = 16
DIM_FF = 64
NUM_LAYERS = 2
SEQ = 8
BATCH = 2
LN_EPS = 1e-5
NEG_INF = -1e30


def _layernorm(x, gamma, beta):
    mean = jnp.mean(x, axis=-1, keepdims=True)
    var = jnp.mean((x - mean) ** 2, axis=-1, keepdims=True)
    return (x - mean) * lax.rsqrt(var + LN_EPS) * gamma + beta


# --------------------------------------------------------------------------
# Single fused kernel: encoder layers + aggregation + latent heads + reparam.
# x rows are ordered (s, b) (contiguous flatten of the seq-first input), the
# block-diagonal attn_bias keeps attention within each batch element and
# agg_mat performs the per-batch mean over the sequence as one tiny matmul.
# --------------------------------------------------------------------------
def fused_latent_encoder_kernel(
        x_ref,                                    # (B*S, D)
        bias_ref,                                 # (B*S, B*S) additive attn bias
        agg_ref,                                  # (B, B*S)   per-batch averaging
        wqkv_ref, bqkv_ref, wo_ref, bo_ref,       # stacked (NUM_LAYERS, ...)
        g1_ref, be1_ref, w1_ref, bb1_ref,
        w2_ref, bb2_ref, g2_ref, be2_ref,
        wh_ref, bh_ref,                           # fused [mu | log_sigma] head
        eps_ref,                                  # (B, L)
        out_ref,                                  # (B, 3L) = [mu | log_sigma | z]
        *, nheads, num_layers, num_latent):
    _, D = x_ref.shape
    hd = D // nheads
    scale = 1.0 / math.sqrt(hd)

    attn_bias = bias_ref[...]
    h = x_ref[...]                                # (B*S, D), f32

    # ----- transformer encoder (post-norm layers, statically unrolled) -----
    # TODO(synk): src_key_padding_mask path not implemented (x_mask=None only).
    for l in range(num_layers):
        qkv = (jnp.dot(h, wqkv_ref[l], preferred_element_type=jnp.float32)
               + bqkv_ref[l])                     # (B*S, 3D)
        q = qkv[:, 0:D]
        k = qkv[:, D:2 * D]
        v = qkv[:, 2 * D:3 * D]

        # per-head scaled-dot-product attention; heads stay in registers
        head_outs = []
        for hh in range(nheads):
            sl = slice(hh * hd, (hh + 1) * hd)
            s = lax.dot_general(q[:, sl], k[:, sl], (((1,), (1,)), ((), ())),
                                preferred_element_type=jnp.float32) * scale
            s = s + attn_bias                     # block-diagonal (per-batch) mask
            s = s - jnp.max(s, axis=-1, keepdims=True)
            p = jnp.exp(s)
            p = p * pl.reciprocal(jnp.sum(p, axis=-1, keepdims=True), approx=True)
            head_outs.append(jnp.dot(p, v[:, sl],
                                     preferred_element_type=jnp.float32))
        attn = jnp.concatenate(head_outs, axis=-1)                     # (B*S, D)

        attn = (jnp.dot(attn, wo_ref[l], preferred_element_type=jnp.float32)
                + bo_ref[l])
        y = _layernorm(h + attn, g1_ref[l], be1_ref[l])   # dropout == identity

        ff = jnp.maximum(
            jnp.dot(y, w1_ref[l], preferred_element_type=jnp.float32) + bb1_ref[l],
            0.0)
        ff = jnp.dot(ff, w2_ref[l], preferred_element_type=jnp.float32) + bb2_ref[l]
        h = _layernorm(y + ff, g2_ref[l], be2_ref[l])

    # ----- AverageAggregator: per-batch mean over the sequence axis -----
    agg = jnp.dot(agg_ref[...], h, preferred_element_type=jnp.float32)   # (B, D)

    # ----- fused mu / log_sigma heads + reparameterization -----
    heads = (jnp.dot(agg, wh_ref[...], preferred_element_type=jnp.float32)
             + bh_ref[...])                                              # (B, 2L)
    mu = heads[:, 0:num_latent]
    log_sigma = heads[:, num_latent:2 * num_latent]
    z = eps_ref[...] * jnp.exp(0.5 * log_sigma) + mu
    out_ref[...] = jnp.concatenate([mu, log_sigma, z], axis=-1)          # (B, 3L)


# --------------------------------------------------------------------------
# Parameter init (deterministic, synthetic): per-layer weights stacked along a
# leading NUM_LAYERS axis; mu / log_sigma heads fused into one (D, 2L) weight.
# --------------------------------------------------------------------------
_LAYER_KEYS = ("wqkv", "bqkv", "wo", "bo", "ln1_g", "ln1_b",
               "w1", "b1", "w2", "b2", "ln2_g", "ln2_b")


def init_params(key):
    def dense(k, shape, scale=0.1):
        return scale * jax.random.normal(k, shape, dtype=jnp.float32)

    keys = jax.random.split(key, NUM_LAYERS + 1)
    per_layer = []
    for lkey in keys[:NUM_LAYERS]:
        ks = jax.random.split(lkey, 8)
        per_layer.append(dict(
            wqkv=dense(ks[0], (D_MODEL, 3 * D_MODEL)),
            bqkv=dense(ks[1], (1, 3 * D_MODEL)),
            wo=dense(ks[2], (D_MODEL, D_MODEL)),
            bo=dense(ks[3], (1, D_MODEL)),
            ln1_g=jnp.ones((1, D_MODEL), jnp.float32),
            ln1_b=jnp.zeros((1, D_MODEL), jnp.float32),
            w1=dense(ks[4], (D_MODEL, DIM_FF)),
            b1=dense(ks[5], (1, DIM_FF)),
            w2=dense(ks[6], (DIM_FF, D_MODEL)),
            b2=dense(ks[7], (1, D_MODEL)),
            ln2_g=jnp.ones((1, D_MODEL), jnp.float32),
            ln2_b=jnp.zeros((1, D_MODEL), jnp.float32),
        ))
    stacked = {k: jnp.stack([lp[k] for lp in per_layer], axis=0)
               for k in _LAYER_KEYS}

    hk = jax.random.split(keys[-1], 4)
    head = dict(
        w=jnp.concatenate([dense(hk[0], (NUM_HIDDEN, NUM_LATENT)),
                           dense(hk[2], (NUM_HIDDEN, NUM_LATENT))], axis=-1),
        b=jnp.concatenate([dense(hk[1], (1, NUM_LATENT)),
                           dense(hk[3], (1, NUM_LATENT))], axis=-1),
    )
    return dict(layers=stacked, head=head)


# --------------------------------------------------------------------------
# Forward wrapper: one pallas_call for the whole module.
# --------------------------------------------------------------------------
@jax.jit
def latent_encoder_forward(x_sbd, params, eps, x_mask=None):
    """x_sbd: (S, B, D) seq-first, as the PyTorch module expects.
    Returns (mu, log_sigma, z), each (B, NUM_LATENT)."""
    assert x_mask is None  # TODO(synk): masked attention / masked aggregation path
    S, B, D = x_sbd.shape
    L = NUM_LATENT

    # Contiguous flatten (pure metadata, no transpose copy): row r <-> (s=r//B, b=r%B)
    x_flat = x_sbd.reshape(S * B, D)

    # Compile-time constants (XLA constant-folds these): block-diagonal attention
    # bias (same-batch rows only) and the per-batch sequence-averaging matrix.
    r = jnp.arange(S * B, dtype=jnp.int32)
    same_batch = (r[:, None] % B) == (r[None, :] % B)
    attn_bias = jnp.where(same_batch, 0.0, NEG_INF).astype(jnp.float32)      # (B*S, B*S)
    bidx = jnp.arange(B, dtype=jnp.int32)
    agg_mat = jnp.where((r[None, :] % B) == bidx[:, None],
                        1.0 / S, 0.0).astype(jnp.float32)                    # (B, B*S)

    layer_ws = [params["layers"][k] for k in _LAYER_KEYS]
    args = (x_flat, attn_bias, agg_mat, *layer_ws,
            params["head"]["w"], params["head"]["b"], eps)

    out = pl.pallas_call(
        functools.partial(fused_latent_encoder_kernel,
                          nheads=NHEADS, num_layers=NUM_LAYERS, num_latent=L),
        out_shape=jax.ShapeDtypeStruct((B, 3 * L), jnp.float32),
    )(*args)

    return out[:, 0:L], out[:, L:2 * L], out[:, 2 * L:3 * L]


if __name__ == "__main__":
    key = jax.random.PRNGKey(0)
    k_x, k_eps, k_p = jax.random.split(key, 3)
    x = jax.random.normal(k_x, (SEQ, BATCH, D_MODEL), dtype=jnp.float32)
    # eps plays the role of torch.randn_like(std) (supplied for determinism)
    eps = jax.random.normal(k_eps, (BATCH, NUM_LATENT), dtype=jnp.float32)
    params = init_params(k_p)

    mu, log_sigma, z = latent_encoder_forward(x, params, eps)
    jax.block_until_ready((mu, log_sigma, z))

    assert mu.shape == (BATCH, NUM_LATENT)
    assert log_sigma.shape == (BATCH, NUM_LATENT)
    assert z.shape == (BATCH, NUM_LATENT)
    assert bool(jnp.all(jnp.isfinite(mu))) and bool(jnp.all(jnp.isfinite(z)))
    print("KERNEL_OK")
</pallas_src>

<mosaic_0001>
module attributes {stable_mosaic.version = 11 : i64} {
  func.func @fused_latent_encoder_kernel(%arg0: memref<16x32xf32, #tpu.memory_space<vmem>>, %arg1: memref<16x16xf32, #tpu.memory_space<vmem>>, %arg2: memref<2x16xf32, #tpu.memory_space<vmem>>, %arg3: memref<2x32x96xf32, #tpu.memory_space<vmem>>, %arg4: memref<2x1x96xf32, #tpu.memory_space<vmem>>, %arg5: memref<2x32x32xf32, #tpu.memory_space<vmem>>, %arg6: memref<2x1x32xf32, #tpu.memory_space<vmem>>, %arg7: memref<2x1x32xf32, #tpu.memory_space<vmem>>, %arg8: memref<2x1x32xf32, #tpu.memory_space<vmem>>, %arg9: memref<2x32x64xf32, #tpu.memory_space<vmem>>, %arg10: memref<2x1x64xf32, #tpu.memory_space<vmem>>, %arg11: memref<2x64x32xf32, #tpu.memory_space<vmem>>, %arg12: memref<2x1x32xf32, #tpu.memory_space<vmem>>, %arg13: memref<2x1x32xf32, #tpu.memory_space<vmem>>, %arg14: memref<2x1x32xf32, #tpu.memory_space<vmem>>, %arg15: memref<32x32xf32, #tpu.memory_space<vmem>>, %arg16: memref<1x32xf32, #tpu.memory_space<vmem>>, %arg17: memref<2x16xf32, #tpu.memory_space<vmem>>, %arg18: memref<2x48xf32, #tpu.memory_space<vmem>>) attributes {dimension_semantics = [], scalar_prefetch = 0 : i64, scratch_operands = 0 : i64, tpu.core_type = #tpu.core_type<tc>} {
    %c0 = arith.constant 0 : index
    %c0_0 = arith.constant 0 : index
    %0 = vector.load %arg1[%c0, %c0_0] : memref<16x16xf32, #tpu.memory_space<vmem>>, vector<16x16xf32>
    %c0_1 = arith.constant 0 : index
    %c0_2 = arith.constant 0 : index
    %1 = vector.load %arg0[%c0_1, %c0_2] : memref<16x32xf32, #tpu.memory_space<vmem>>, vector<16x32xf32>
    %c0_3 = arith.constant 0 : index
    %c0_4 = arith.constant 0 : index
    %c0_5 = arith.constant 0 : index
    %2 = vector.load %arg3[%c0_3, %c0_4, %c0_5] : memref<2x32x96xf32, #tpu.memory_space<vmem>>, vector<1x32x96xf32>
    %3 = vector.shape_cast %2 : vector<1x32x96xf32> to vector<32x96xf32>
    %cst = arith.constant dense<0.000000e+00> : vector<16x96xf32>
    %4 = tpu.matmul %1, %3, %cst {dimension_numbers = #tpu.dot_dimension_numbers<[1], [0], [0], [1], [0, 0, 1, 1], [], []>} : vector<16x32xf32>, vector<32x96xf32>, vector<16x96xf32> -> vector<16x96xf32>
    %c0_6 = arith.constant 0 : index
    %c0_7 = arith.constant 0 : index
    %c0_8 = arith.constant 0 : index
    %5 = vector.load %arg4[%c0_6, %c0_7, %c0_8] : memref<2x1x96xf32, #tpu.memory_space<vmem>>, vector<1x1x96xf32>
    %6 = vector.shape_cast %5 : vector<1x1x96xf32> to vector<1x96xf32>
    %7 = vector.broadcast %6 : vector<1x96xf32> to vector<16x96xf32>
    %8 = arith.addf %4, %7 : vector<16x96xf32>
    %9 = vector.extract_strided_slice %8 {offsets = [0, 0], sizes = [16, 32], strides = [1, 1]} : vector<16x96xf32> to vector<16x32xf32>
    %10 = vector.extract_strided_slice %8 {offsets = [0, 32], sizes = [16, 32], strides = [1, 1]} : vector<16x96xf32> to vector<16x32xf32>
    %11 = vector.extract_strided_slice %8 {offsets = [0, 64], sizes = [16, 32], strides = [1, 1]} : vector<16x96xf32> to vector<16x32xf32>
    %12 = vector.extract_strided_slice %9 {offsets = [0, 0], sizes = [16, 8], strides = [1, 1]} : vector<16x32xf32> to vector<16x8xf32>
    %13 = vector.extract_strided_slice %10 {offsets = [0, 0], sizes = [16, 8], strides = [1, 1]} : vector<16x32xf32> to vector<16x8xf32>
    %cst_9 = arith.constant dense<0.000000e+00> : vector<16x16xf32>
    %14 = tpu.matmul %12, %13, %cst_9 {dimension_numbers = #tpu.dot_dimension_numbers<[1], [1], [0], [0], [0, 0, 1, 0], [], []>} : vector<16x8xf32>, vector<16x8xf32>, vector<16x16xf32> -> vector<16x16xf32>
    %cst_10 = arith.constant 0.353553385 : f32
    %15 = vector.broadcast %cst_10 : f32 to vector<16x16xf32>
    %16 = arith.mulf %14, %15 : vector<16x16xf32>
    %17 = arith.addf %16, %0 : vector<16x16xf32>
    %cst_11 = arith.constant dense<0xFF800000> : vector<16xf32>
    %18 = vector.multi_reduction <maximumf>, %17, %cst_11 [1] : vector<16x16xf32> to vector<16xf32>
    %19 = vector.shape_cast %18 : vector<16xf32> to vector<16x1xf32>
    %20 = vector.broadcast %19 : vector<16x1xf32> to vector<16x16xf32>
    %21 = arith.subf %17, %20 : vector<16x16xf32>
    %22 = math.exp %21 : vector<16x16xf32>
    %cst_12 = arith.constant dense<0.000000e+00> : vector<16xf32>
    %23 = vector.multi_reduction <add>, %22, %cst_12 [1] : vector<16x16xf32> to vector<16xf32>
    %24 = vector.shape_cast %23 : vector<16xf32> to vector<16x1xf32>
    %25 = tpu.reciprocal %24 {approx = true} : vector<16x1xf32> -> vector<16x1xf32>
    %26 = vector.broadcast %25 : vector<16x1xf32> to vector<16x16xf32>
    %27 = arith.mulf %22, %26 : vector<16x16xf32>
    %28 = vector.extract_strided_slice %11 {offsets = [0, 0], sizes = [16, 8], strides = [1, 1]} : vector<16x32xf32> to vector<16x8xf32>
    %cst_13 = arith.constant dense<0.000000e+00> : vector<16x8xf32>
    %29 = tpu.matmul %27, %28, %cst_13 {dimension_numbers = #tpu.dot_dimension_numbers<[1], [0], [0], [1], [0, 0, 1, 1], [], []>} : vector<16x16xf32>, vector<16x8xf32>, vector<16x8xf32> -> vector<16x8xf32>
    %30 = vector.extract_strided_slice %9 {offsets = [0, 8], sizes = [16, 8], strides = [1, 1]} : vector<16x32xf32> to vector<16x8xf32>
    %31 = vector.extract_strided_slice %10 {offsets = [0, 8], sizes = [16, 8], strides = [1, 1]} : vector<16x32xf32> to vector<16x8xf32>
    %cst_14 = arith.constant dense<0.000000e+00> : vector<16x16xf32>
    %32 = tpu.matmul %30, %31, %cst_14 {dimension_numbers = #tpu.dot_dimension_numbers<[1], [1], [0], [0], [0, 0, 1, 0], [], []>} : vector<16x8xf32>, vector<16x8xf32>, vector<16x16xf32> -> vector<16x16xf32>
    %cst_15 = arith.constant 0.353553385 : f32
    %33 = vector.broadcast %cst_15 : f32 to vector<16x16xf32>
    %34 = arith.mulf %32, %33 : vector<16x16xf32>
    %35 = arith.addf %34, %0 : vector<16x16xf32>
    %cst_16 = arith.constant dense<0xFF800000> : vector<16xf32>
    %36 = vector.multi_reduction <maximumf>, %35, %cst_16 [1] : vector<16x16xf32> to vector<16xf32>
    %37 = vector.shape_cast %36 : vector<16xf32> to vector<16x1xf32>
    %38 = vector.broadcast %37 : vector<16x1xf32> to vector<16x16xf32>
    %39 = arith.subf %35, %38 : vector<16x16xf32>
    %40 = math.exp %39 : vector<16x16xf32>
    %cst_17 = arith.constant dense<0.000000e+00> : vector<16xf32>
    %41 = vector.multi_reduction <add>, %40, %cst_17 [1] : vector<16x16xf32> to vector<16xf32>
    %42 = vector.shape_cast %41 : vector<16xf32> to vector<16x1xf32>
    %43 = tpu.reciprocal %42 {approx = true} : vector<16x1xf32> -> vector<16x1xf32>
    %44 = vector.broadcast %43 : vector<16x1xf32> to vector<16x16xf32>
    %45 = arith.mulf %40, %44 : vector<16x16xf32>
    %46 = vector.extract_strided_slice %11 {offsets = [0, 8], sizes = [16, 8], strides = [1, 1]} : vector<16x32xf32> to vector<16x8xf32>
    %cst_18 = arith.constant dense<0.000000e+00> : vector<16x8xf32>
    %47 = tpu.matmul %45, %46, %cst_18 {dimension_numbers = #tpu.dot_dimension_numbers<[1], [0], [0], [1], [0, 0, 1, 1], [], []>} : vector<16x16xf32>, vector<16x8xf32>, vector<16x8xf32> -> vector<16x8xf32>
    %48 = vector.extract_strided_slice %9 {offsets = [0, 16], sizes = [16, 8], strides = [1, 1]} : vector<16x32xf32> to vector<16x8xf32>
    %49 = vector.extract_strided_slice %10 {offsets = [0, 16], sizes = [16, 8], strides = [1, 1]} : vector<16x32xf32> to vector<16x8xf32>
    %cst_19 = arith.constant dense<0.000000e+00> : vector<16x16xf32>
    %50 = tpu.matmul %48, %49, %cst_19 {dimension_numbers = #tpu.dot_dimension_numbers<[1], [1], [0], [0], [0, 0, 1, 0], [], []>} : vector<16x8xf32>, vector<16x8xf32>, vector<16x16xf32> -> vector<16x16xf32>
    %cst_20 = arith.constant 0.353553385 : f32
    %51 = vector.broadcast %cst_20 : f32 to vector<16x16xf32>
    %52 = arith.mulf %50, %51 : vector<16x16xf32>
    %53 = arith.addf %52, %0 : vector<16x16xf32>
    %cst_21 = arith.constant dense<0xFF800000> : vector<16xf32>
    %54 = vector.multi_reduction <maximumf>, %53, %cst_21 [1] : vector<16x16xf32> to vector<16xf32>
    %55 = vector.shape_cast %54 : vector<16xf32> to vector<16x1xf32>
    %56 = vector.broadcast %55 : vector<16x1xf32> to vector<16x16xf32>
    %57 = arith.subf %53, %56 : vector<16x16xf32>
    %58 = math.exp %57 : vector<16x16xf32>
    %cst_22 = arith.constant dense<0.000000e+00> : vector<16xf32>
    %59 = vector.multi_reduction <add>, %58, %cst_22 [1] : vector<16x16xf32> to vector<16xf32>
    %60 = vector.shape_cast %59 : vector<16xf32> to vector<16x1xf32>
    %61 = tpu.reciprocal %60 {approx = true} : vector<16x1xf32> -> vector<16x1xf32>
    %62 = vector.broadcast %61 : vector<16x1xf32> to vector<16x16xf32>
    %63 = arith.mulf %58, %62 : vector<16x16xf32>
    %64 = vector.extract_strided_slice %11 {offsets = [0, 16], sizes = [16, 8], strides = [1, 1]} : vector<16x32xf32> to vector<16x8xf32>
    %cst_23 = arith.constant dense<0.000000e+00> : vector<16x8xf32>
    %65 = tpu.matmul %63, %64, %cst_23 {dimension_numbers = #tpu.dot_dimension_numbers<[1], [0], [0], [1], [0, 0, 1, 1], [], []>} : vector<16x16xf32>, vector<16x8xf32>, vector<16x8xf32> -> vector<16x8xf32>
    %66 = vector.extract_strided_slice %9 {offsets = [0, 24], sizes = [16, 8], strides = [1, 1]} : vector<16x32xf32> to vector<16x8xf32>
    %67 = vector.extract_strided_slice %10 {offsets = [0, 24], sizes = [16, 8], strides = [1, 1]} : vector<16x32xf32> to vector<16x8xf32>
    %cst_24 = arith.constant dense<0.000000e+00> : vector<16x16xf32>
    %68 = tpu.matmul %66, %67, %cst_24 {dimension_numbers = #tpu.dot_dimension_numbers<[1], [1], [0], [0], [0, 0, 1, 0], [], []>} : vector<16x8xf32>, vector<16x8xf32>, vector<16x16xf32> -> vector<16x16xf32>
    %cst_25 = arith.constant 0.353553385 : f32
    %69 = vector.broadcast %cst_25 : f32 to vector<16x16xf32>
    %70 = arith.mulf %68, %69 : vector<16x16xf32>
    %71 = arith.addf %70, %0 : vector<16x16xf32>
    %cst_26 = arith.constant dense<0xFF800000> : vector<16xf32>
    %72 = vector.multi_reduction <maximumf>, %71, %cst_26 [1] : vector<16x16xf32> to vector<16xf32>
    %73 = vector.shape_cast %72 : vector<16xf32> to vector<16x1xf32>
    %74 = vector.broadcast %73 : vector<16x1xf32> to vector<16x16xf32>
    %75 = arith.subf %71, %74 : vector<16x16xf32>
    %76 = math.exp %75 : vector<16x16xf32>
    %cst_27 = arith.constant dense<0.000000e+00> : vector<16xf32>
    %77 = vector.multi_reduction <add>, %76, %cst_27 [1] : vector<16x16xf32> to vector<16xf32>
    %78 = vector.shape_cast %77 : vector<16xf32> to vector<16x1xf32>
    %79 = tpu.reciprocal %78 {approx = true} : vector<16x1xf32> -> vector<16x1xf32>
    %80 = vector.broadcast %79 : vector<16x1xf32> to vector<16x16xf32>
    %81 = arith.mulf %76, %80 : vector<16x16xf32>
    %82 = vector.extract_strided_slice %11 {offsets = [0, 24], sizes = [16, 8], strides = [1, 1]} : vector<16x32xf32> to vector<16x8xf32>
    %cst_28 = arith.constant dense<0.000000e+00> : vector<16x8xf32>
    %83 = tpu.matmul %81, %82, %cst_28 {dimension_numbers = #tpu.dot_dimension_numbers<[1], [0], [0], [1], [0, 0, 1, 1], [], []>} : vector<16x16xf32>, vector<16x8xf32>, vector<16x8xf32> -> vector<16x8xf32>
    %84 = tpu.concatenate %29, %47, %65, %83 in 1 : vector<16x8xf32>, vector<16x8xf32>, vector<16x8xf32>, vector<16x8xf32> -> vector<16x32xf32>
    %c0_29 = arith.constant 0 : index
    %c0_30 = arith.constant 0 : index
    %c0_31 = arith.constant 0 : index
    %85 = vector.load %arg5[%c0_29, %c0_30, %c0_31] : memref<2x32x32xf32, #tpu.memory_space<vmem>>, vector<1x32x32xf32>
    %86 = vector.shape_cast %85 : vector<1x32x32xf32> to vector<32x32xf32>
    %cst_32 = arith.constant dense<0.000000e+00> : vector<16x32xf32>
    %87 = tpu.matmul %84, %86, %cst_32 {dimension_numbers = #tpu.dot_dimension_numbers<[1], [0], [0], [1], [0, 0, 1, 1], [], []>} : vector<16x32xf32>, vector<32x32xf32>, vector<16x32xf32> -> vector<16x32xf32>
    %c0_33 = arith.constant 0 : index
    %c0_34 = arith.constant 0 : index
    %c0_35 = arith.constant 0 : index
    %88 = vector.load %arg6[%c0_33, %c0_34, %c0_35] : memref<2x1x32xf32, #tpu.memory_space<vmem>>, vector<1x1x32xf32>
    %89 = vector.shape_cast %88 : vector<1x1x32xf32> to vector<1x32xf32>
    %90 = vector.broadcast %89 : vector<1x32xf32> to vector<16x32xf32>
    %91 = arith.addf %87, %90 : vector<16x32xf32>
    %92 = arith.addf %1, %91 : vector<16x32xf32>
    %c0_36 = arith.constant 0 : index
    %c0_37 = arith.constant 0 : index
    %c0_38 = arith.constant 0 : index
    %93 = vector.load %arg7[%c0_36, %c0_37, %c0_38] : memref<2x1x32xf32, #tpu.memory_space<vmem>>, vector<1x1x32xf32>
    %94 = vector.shape_cast %93 : vector<1x1x32xf32> to vector<1x32xf32>
    %c0_39 = arith.constant 0 : index
    %c0_40 = arith.constant 0 : index
    %c0_41 = arith.constant 0 : index
    %95 = vector.load %arg8[%c0_39, %c0_40, %c0_41] : memref<2x1x32xf32, #tpu.memory_space<vmem>>, vector<1x1x32xf32>
    %96 = vector.shape_cast %95 : vector<1x1x32xf32> to vector<1x32xf32>
    %cst_42 = arith.constant dense<0.000000e+00> : vector<16xf32>
    %97 = vector.multi_reduction <add>, %92, %cst_42 [1] : vector<16x32xf32> to vector<16xf32>
    %98 = vector.shape_cast %97 : vector<16xf32> to vector<16x1xf32>
    %cst_43 = arith.constant 3.200000e+01 : f32
    %99 = vector.broadcast %cst_43 : f32 to vector<16x1xf32>
    %100 = arith.divf %98, %99 : vector<16x1xf32>
    %101 = vector.broadcast %100 : vector<16x1xf32> to vector<16x32xf32>
    %102 = arith.subf %92, %101 : vector<16x32xf32>
    %103 = arith.mulf %102, %102 : vector<16x32xf32>
    %cst_44 = arith.constant dense<0.000000e+00> : vector<16xf32>
    %104 = vector.multi_reduction <add>, %103, %cst_44 [1] : vector<16x32xf32> to vector<16xf32>
    %105 = vector.shape_cast %104 : vector<16xf32> to vector<16x1xf32>
    %cst_45 = arith.constant 3.200000e+01 : f32
    %106 = vector.broadcast %cst_45 : f32 to vector<16x1xf32>
    %107 = arith.divf %105, %106 : vector<16x1xf32>
    %108 = vector.broadcast %100 : vector<16x1xf32> to vector<16x32xf32>
    %109 = arith.subf %92, %108 : vector<16x32xf32>
    %cst_46 = arith.constant 9.99999974E-6 : f32
    %110 = vector.broadcast %cst_46 : f32 to vector<16x1xf32>
    %111 = arith.addf %107, %110 : vector<16x1xf32>
    %112 = math.rsqrt %111 : vector<16x1xf32>
    %113 = vector.broadcast %112 : vector<16x1xf32> to vector<16x32xf32>
    %114 = arith.mulf %109, %113 : vector<16x32xf32>
    %115 = vector.broadcast %94 : vector<1x32xf32> to vector<16x32xf32>
    %116 = arith.mulf %114, %115 : vector<16x32xf32>
    %117 = vector.broadcast %96 : vector<1x32xf32> to vector<16x32xf32>
    %118 = arith.addf %116, %117 : vector<16x32xf32>
    %c0_47 = arith.constant 0 : index
    %c0_48 = arith.constant 0 : index
    %c0_49 = arith.constant 0 : index
    %119 = vector.load %arg9[%c0_47, %c0_48, %c0_49] : memref<2x32x64xf32, #tpu.memory_space<vmem>>, vector<1x32x64xf32>
    %120 = vector.shape_cast %119 : vector<1x32x64xf32> to vector<32x64xf32>
    %cst_50 = arith.constant dense<0.000000e+00> : vector<16x64xf32>
    %121 = tpu.matmul %118, %120, %cst_50 {dimension_numbers = #tpu.dot_dimension_numbers<[1], [0], [0], [1], [0, 0, 1, 1], [], []>} : vector<16x32xf32>, vector<32x64xf32>, vector<16x64xf32> -> vector<16x64xf32>
    %c0_51 = arith.constant 0 : index
    %c0_52 = arith.constant 0 : index
    %c0_53 = arith.constant 0 : index
    %122 = vector.load %arg10[%c0_51, %c0_52, %c0_53] : memref<2x1x64xf32, #tpu.memory_space<vmem>>, vector<1x1x64xf32>
    %123 = vector.shape_cast %122 : vector<1x1x64xf32> to vector<1x64xf32>
    %124 = vector.broadcast %123 : vector<1x64xf32> to vector<16x64xf32>
    %125 = arith.addf %121, %124 : vector<16x64xf32>
    %cst_54 = arith.constant 0.000000e+00 : f32
    %126 = vector.broadcast %cst_54 : f32 to vector<16x64xf32>
    %127 = arith.maximumf %125, %126 : vector<16x64xf32>
    %c0_55 = arith.constant 0 : index
    %c0_56 = arith.constant 0 : index
    %c0_57 = arith.constant 0 : index
    %128 = vector.load %arg11[%c0_55, %c0_56, %c0_57] : memref<2x64x32xf32, #tpu.memory_space<vmem>>, vector<1x64x32xf32>
    %129 = vector.shape_cast %128 : vector<1x64x32xf32> to vector<64x32xf32>
    %cst_58 = arith.constant dense<0.000000e+00> : vector<16x32xf32>
    %130 = tpu.matmul %127, %129, %cst_58 {dimension_numbers = #tpu.dot_dimension_numbers<[1], [0], [0], [1], [0, 0, 1, 1], [], []>} : vector<16x64xf32>, vector<64x32xf32>, vector<16x32xf32> -> vector<16x32xf32>
    %c0_59 = arith.constant 0 : index
    %c0_60 = arith.constant 0 : index
    %c0_61 = arith.constant 0 : index
    %131 = vector.load %arg12[%c0_59, %c0_60, %c0_61] : memref<2x1x32xf32, #tpu.memory_space<vmem>>, vector<1x1x32xf32>
    %132 = vector.shape_cast %131 : vector<1x1x32xf32> to vector<1x32xf32>
    %133 = vector.broadcast %132 : vector<1x32xf32> to vector<16x32xf32>
    %134 = arith.addf %130, %133 : vector<16x32xf32>
    %135 = arith.addf %118, %134 : vector<16x32xf32>
    %c0_62 = arith.constant 0 : index
    %c0_63 = arith.constant 0 : index
    %c0_64 = arith.constant 0 : index
    %136 = vector.load %arg13[%c0_62, %c0_63, %c0_64] : memref<2x1x32xf32, #tpu.memory_space<vmem>>, vector<1x1x32xf32>
    %137 = vector.shape_cast %136 : vector<1x1x32xf32> to vector<1x32xf32>
    %c0_65 = arith.constant 0 : index
    %c0_66 = arith.constant 0 : index
    %c0_67 = arith.constant 0 : index
    %138 = vector.load %arg14[%c0_65, %c0_66, %c0_67] : memref<2x1x32xf32, #tpu.memory_space<vmem>>, vector<1x1x32xf32>
    %139 = vector.shape_cast %138 : vector<1x1x32xf32> to vector<1x32xf32>
    %cst_68 = arith.constant dense<0.000000e+00> : vector<16xf32>
    %140 = vector.multi_reduction <add>, %135, %cst_68 [1] : vector<16x32xf32> to vector<16xf32>
    %141 = vector.shape_cast %140 : vector<16xf32> to vector<16x1xf32>
    %cst_69 = arith.constant 3.200000e+01 : f32
    %142 = vector.broadcast %cst_69 : f32 to vector<16x1xf32>
    %143 = arith.divf %141, %142 : vector<16x1xf32>
    %144 = vector.broadcast %143 : vector<16x1xf32> to vector<16x32xf32>
    %145 = arith.subf %135, %144 : vector<16x32xf32>
    %146 = arith.mulf %145, %145 : vector<16x32xf32>
    %cst_70 = arith.constant dense<0.000000e+00> : vector<16xf32>
    %147 = vector.multi_reduction <add>, %146, %cst_70 [1] : vector<16x32xf32> to vector<16xf32>
    %148 = vector.shape_cast %147 : vector<16xf32> to vector<16x1xf32>
    %cst_71 = arith.constant 3.200000e+01 : f32
    %149 = vector.broadcast %cst_71 : f32 to vector<16x1xf32>
    %150 = arith.divf %148, %149 : vector<16x1xf32>
    %151 = vector.broadcast %143 : vector<16x1xf32> to vector<16x32xf32>
    %152 = arith.subf %135, %151 : vector<16x32xf32>
    %cst_72 = arith.constant 9.99999974E-6 : f32
    %153 = vector.broadcast %cst_72 : f32 to vector<16x1xf32>
    %154 = arith.addf %150, %153 : vector<16x1xf32>
    %155 = math.rsqrt %154 : vector<16x1xf32>
    %156 = vector.broadcast %155 : vector<16x1xf32> to vector<16x32xf32>
    %157 = arith.mulf %152, %156 : vector<16x32xf32>
    %158 = vector.broadcast %137 : vector<1x32xf32> to vector<16x32xf32>
    %159 = arith.mulf %157, %158 : vector<16x32xf32>
    %160 = vector.broadcast %139 : vector<1x32xf32> to vector<16x32xf32>
    %161 = arith.addf %159, %160 : vector<16x32xf32>
    %c1 = arith.constant 1 : index
    %c0_73 = arith.constant 0 : index
    %c0_74 = arith.constant 0 : index
    %162 = vector.load %arg3[%c1, %c0_73, %c0_74] : memref<2x32x96xf32, #tpu.memory_space<vmem>>, vector<1x32x96xf32>
    %163 = vector.shape_cast %162 : vector<1x32x96xf32> to vector<32x96xf32>
    %cst_75 = arith.constant dense<0.000000e+00> : vector<16x96xf32>
    %164 = tpu.matmul %161, %163, %cst_75 {dimension_numbers = #tpu.dot_dimension_numbers<[1], [0], [0], [1], [0, 0, 1, 1], [], []>} : vector<16x32xf32>, vector<32x96xf32>, vector<16x96xf32> -> vector<16x96xf32>
    %c1_76 = arith.constant 1 : index
    %c0_77 = arith.constant 0 : index
    %c0_78 = arith.constant 0 : index
    %165 = vector.load %arg4[%c1_76, %c0_77, %c0_78] : memref<2x1x96xf32, #tpu.memory_space<vmem>>, vector<1x1x96xf32>
    %166 = vector.shape_cast %165 : vector<1x1x96xf32> to vector<1x96xf32>
    %167 = vector.broadcast %166 : vector<1x96xf32> to vector<16x96xf32>
    %168 = arith.addf %164, %167 : vector<16x96xf32>
    %169 = vector.extract_strided_slice %168 {offsets = [0, 0], sizes = [16, 32], strides = [1, 1]} : vector<16x96xf32> to vector<16x32xf32>
    %170 = vector.extract_strided_slice %168 {offsets = [0, 32], sizes = [16, 32], strides = [1, 1]} : vector<16x96xf32> to vector<16x32xf32>
    %171 = vector.extract_strided_slice %168 {offsets = [0, 64], sizes = [16, 32], strides = [1, 1]} : vector<16x96xf32> to vector<16x32xf32>
    %172 = vector.extract_strided_slice %169 {offsets = [0, 0], sizes = [16, 8], strides = [1, 1]} : vector<16x32xf32> to vector<16x8xf32>
    %173 = vector.extract_strided_slice %170 {offsets = [0, 0], sizes = [16, 8], strides = [1, 1]} : vector<16x32xf32> to vector<16x8xf32>
    %cst_79 = arith.constant dense<0.000000e+00> : vector<16x16xf32>
    %174 = tpu.matmul %172, %173, %cst_79 {dimension_numbers = #tpu.dot_dimension_numbers<[1], [1], [0], [0], [0, 0, 1, 0], [], []>} : vector<16x8xf32>, vector<16x8xf32>, vector<16x16xf32> -> vector<16x16xf32>
    %cst_80 = arith.constant 0.353553385 : f32
    %175 = vector.broadcast %cst_80 : f32 to vector<16x16xf32>
    %176 = arith.mulf %174, %175 : vector<16x16xf32>
    %177 = arith.addf %176, %0 : vector<16x16xf32>
    %cst_81 = arith.constant dense<0xFF800000> : vector<16xf32>
    %178 = vector.multi_reduction <maximumf>, %177, %cst_81 [1] : vector<16x16xf32> to vector<16xf32>
    %179 = vector.shape_cast %178 : vector<16xf32> to vector<16x1xf32>
    %180 = vector.broadcast %179 : vector<16x1xf32> to vector<16x16xf32>
    %181 = arith.subf %177, %180 : vector<16x16xf32>
    %182 = math.exp %181 : vector<16x16xf32>
    %cst_82 = arith.constant dense<0.000000e+00> : vector<16xf32>
    %183 = vector.multi_reduction <add>, %182, %cst_82 [1] : vector<16x16xf32> to vector<16xf32>
    %184 = vector.shape_cast %183 : vector<16xf32> to vector<16x1xf32>
    %185 = tpu.reciprocal %184 {approx = true} : vector<16x1xf32> -> vector<16x1xf32>
    %186 = vector.broadcast %185 : vector<16x1xf32> to vector<16x16xf32>
    %187 = arith.mulf %182, %186 : vector<16x16xf32>
    %188 = vector.extract_strided_slice %171 {offsets = [0, 0], sizes = [16, 8], strides = [1, 1]} : vector<16x32xf32> to vector<16x8xf32>
    %cst_83 = arith.constant dense<0.000000e+00> : vector<16x8xf32>
    %189 = tpu.matmul %187, %188, %cst_83 {dimension_numbers = #tpu.dot_dimension_numbers<[1], [0], [0], [1], [0, 0, 1, 1], [], []>} : vector<16x16xf32>, vector<16x8xf32>, vector<16x8xf32> -> vector<16x8xf32>
    %190 = vector.extract_strided_slice %169 {offsets = [0, 8], sizes = [16, 8], strides = [1, 1]} : vector<16x32xf32> to vector<16x8xf32>
    %191 = vector.extract_strided_slice %170 {offsets = [0, 8], sizes = [16, 8], strides = [1, 1]} : vector<16x32xf32> to vector<16x8xf32>
    %cst_84 = arith.constant dense<0.000000e+00> : vector<16x16xf32>
    %192 = tpu.matmul %190, %191, %cst_84 {dimension_numbers = #tpu.dot_dimension_numbers<[1], [1], [0], [0], [0, 0, 1, 0], [], []>} : vector<16x8xf32>, vector<16x8xf32>, vector<16x16xf32> -> vector<16x16xf32>
    %cst_85 = arith.constant 0.353553385 : f32
    %193 = vector.broadcast %cst_85 : f32 to vector<16x16xf32>
    %194 = arith.mulf %192, %193 : vector<16x16xf32>
    %195 = arith.addf %194, %0 : vector<16x16xf32>
    %cst_86 = arith.constant dense<0xFF800000> : vector<16xf32>
    %196 = vector.multi_reduction <maximumf>, %195, %cst_86 [1] : vector<16x16xf32> to vector<16xf32>
    %197 = vector.shape_cast %196 : vector<16xf32> to vector<16x1xf32>
    %198 = vector.broadcast %197 : vector<16x1xf32> to vector<16x16xf32>
    %199 = arith.subf %195, %198 : vector<16x16xf32>
    %200 = math.exp %199 : vector<16x16xf32>
    %cst_87 = arith.constant dense<0.000000e+00> : vector<16xf32>
    %201 = vector.multi_reduction <add>, %200, %cst_87 [1] : vector<16x16xf32> to vector<16xf32>
    %202 = vector.shape_cast %201 : vector<16xf32> to vector<16x1xf32>
    %203 = tpu.reciprocal %202 {approx = true} : vector<16x1xf32> -> vector<16x1xf32>
    %204 = vector.broadcast %203 : vector<16x1xf32> to vector<16x16xf32>
    %205 = arith.mulf %200, %204 : vector<16x16xf32>
    %206 = vector.extract_strided_slice %171 {offsets = [0, 8], sizes = [16, 8], strides = [1, 1]} : vector<16x32xf32> to vector<16x8xf32>
    %cst_88 = arith.constant dense<0.000000e+00> : vector<16x8xf32>
    %207 = tpu.matmul %205, %206, %cst_88 {dimension_numbers = #tpu.dot_dimension_numbers<[1], [0], [0], [1], [0, 0, 1, 1], [], []>} : vector<16x16xf32>, vector<16x8xf32>, vector<16x8xf32> -> vector<16x8xf32>
    %208 = vector.extract_strided_slice %169 {offsets = [0, 16], sizes = [16, 8], strides = [1, 1]} : vector<16x32xf32> to vector<16x8xf32>
    %209 = vector.extract_strided_slice %170 {offsets = [0, 16], sizes = [16, 8], strides = [1, 1]} : vector<16x32xf32> to vector<16x8xf32>
    %cst_89 = arith.constant dense<0.000000e+00> : vector<16x16xf32>
    %210 = tpu.matmul %208, %209, %cst_89 {dimension_numbers = #tpu.dot_dimension_numbers<[1], [1], [0], [0], [0, 0, 1, 0], [], []>} : vector<16x8xf32>, vector<16x8xf32>, vector<16x16xf32> -> vector<16x16xf32>
    %cst_90 = arith.constant 0.353553385 : f32
    %211 = vector.broadcast %cst_90 : f32 to vector<16x16xf32>
    %212 = arith.mulf %210, %211 : vector<16x16xf32>
    %213 = arith.addf %212, %0 : vector<16x16xf32>
    %cst_91 = arith.constant dense<0xFF800000> : vector<16xf32>
    %214 = vector.multi_reduction <maximumf>, %213, %cst_91 [1] : vector<16x16xf32> to vector<16xf32>
    %215 = vector.shape_cast %214 : vector<16xf32> to vector<16x1xf32>
    %216 = vector.broadcast %215 : vector<16x1xf32> to vector<16x16xf32>
    %217 = arith.subf %213, %216 : vector<16x16xf32>
    %218 = math.exp %217 : vector<16x16xf32>
    %cst_92 = arith.constant dense<0.000000e+00> : vector<16xf32>
    %219 = vector.multi_reduction <add>, %218, %cst_92 [1] : vector<16x16xf32> to vector<16xf32>
    %220 = vector.shape_cast %219 : vector<16xf32> to vector<16x1xf32>
    %221 = tpu.reciprocal %220 {approx = true} : vector<16x1xf32> -> vector<16x1xf32>
    %222 = vector.broadcast %221 : vector<16x1xf32> to vector<16x16xf32>
    %223 = arith.mulf %218, %222 : vector<16x16xf32>
    %224 = vector.extract_strided_slice %171 {offsets = [0, 16], sizes = [16, 8], strides = [1, 1]} : vector<16x32xf32> to vector<16x8xf32>
    %cst_93 = arith.constant dense<0.000000e+00> : vector<16x8xf32>
    %225 = tpu.matmul %223, %224, %cst_93 {dimension_numbers = #tpu.dot_dimension_numbers<[1], [0], [0], [1], [0, 0, 1, 1], [], []>} : vector<16x16xf32>, vector<16x8xf32>, vector<16x8xf32> -> vector<16x8xf32>
    %226 = vector.extract_strided_slice %169 {offsets = [0, 24], sizes = [16, 8], strides = [1, 1]} : vector<16x32xf32> to vector<16x8xf32>
    %227 = vector.extract_strided_slice %170 {offsets = [0, 24], sizes = [16, 8], strides = [1, 1]} : vector<16x32xf32> to vector<16x8xf32>
    %cst_94 = arith.constant dense<0.000000e+00> : vector<16x16xf32>
    %228 = tpu.matmul %226, %227, %cst_94 {dimension_numbers = #tpu.dot_dimension_numbers<[1], [1], [0], [0], [0, 0, 1, 0], [], []>} : vector<16x8xf32>, vector<16x8xf32>, vector<16x16xf32> -> vector<16x16xf32>
    %cst_95 = arith.constant 0.353553385 : f32
    %229 = vector.broadcast %cst_95 : f32 to vector<16x16xf32>
    %230 = arith.mulf %228, %229 : vector<16x16xf32>
    %231 = arith.addf %230, %0 : vector<16x16xf32>
    %cst_96 = arith.constant dense<0xFF800000> : vector<16xf32>
    %232 = vector.multi_reduction <maximumf>, %231, %cst_96 [1] : vector<16x16xf32> to vector<16xf32>
    %233 = vector.shape_cast %232 : vector<16xf32> to vector<16x1xf32>
    %234 = vector.broadcast %233 : vector<16x1xf32> to vector<16x16xf32>
    %235 = arith.subf %231, %234 : vector<16x16xf32>
    %236 = math.exp %235 : vector<16x16xf32>
    %cst_97 = arith.constant dense<0.000000e+00> : vector<16xf32>
    %237 = vector.multi_reduction <add>, %236, %cst_97 [1] : vector<16x16xf32> to vector<16xf32>
    %238 = vector.shape_cast %237 : vector<16xf32> to vector<16x1xf32>
    %239 = tpu.reciprocal %238 {approx = true} : vector<16x1xf32> -> vector<16x1xf32>
    %240 = vector.broadcast %239 : vector<16x1xf32> to vector<16x16xf32>
    %241 = arith.mulf %236, %240 : vector<16x16xf32>
    %242 = vector.extract_strided_slice %171 {offsets = [0, 24], sizes = [16, 8], strides = [1, 1]} : vector<16x32xf32> to vector<16x8xf32>
    %cst_98 = arith.constant dense<0.000000e+00> : vector<16x8xf32>
    %243 = tpu.matmul %241, %242, %cst_98 {dimension_numbers = #tpu.dot_dimension_numbers<[1], [0], [0], [1], [0, 0, 1, 1], [], []>} : vector<16x16xf32>, vector<16x8xf32>, vector<16x8xf32> -> vector<16x8xf32>
    %244 = tpu.concatenate %189, %207, %225, %243 in 1 : vector<16x8xf32>, vector<16x8xf32>, vector<16x8xf32>, vector<16x8xf32> -> vector<16x32xf32>
    %c1_99 = arith.constant 1 : index
    %c0_100 = arith.constant 0 : index
    %c0_101 = arith.constant 0 : index
    %245 = vector.load %arg5[%c1_99, %c0_100, %c0_101] : memref<2x32x32xf32, #tpu.memory_space<vmem>>, vector<1x32x32xf32>
    %246 = vector.shape_cast %245 : vector<1x32x32xf32> to vector<32x32xf32>
    %cst_102 = arith.constant dense<0.000000e+00> : vector<16x32xf32>
    %247 = tpu.matmul %244, %246, %cst_102 {dimension_numbers = #tpu.dot_dimension_numbers<[1], [0], [0], [1], [0, 0, 1, 1], [], []>} : vector<16x32xf32>, vector<32x32xf32>, vector<16x32xf32> -> vector<16x32xf32>
    %c1_103 = arith.constant 1 : index
    %c0_104 = arith.constant 0 : index
    %c0_105 = arith.constant 0 : index
    %248 = vector.load %arg6[%c1_103, %c0_104, %c0_105] : memref<2x1x32xf32, #tpu.memory_space<vmem>>, vector<1x1x32xf32>
    %249 = vector.shape_cast %248 : vector<1x1x32xf32> to vector<1x32xf32>
    %250 = vector.broadcast %249 : vector<1x32xf32> to vector<16x32xf32>
    %251 = arith.addf %247, %250 : vector<16x32xf32>
    %252 = arith.addf %161, %251 : vector<16x32xf32>
    %c1_106 = arith.constant 1 : index
    %c0_107 = arith.constant 0 : index
    %c0_108 = arith.constant 0 : index
    %253 = vector.load %arg7[%c1_106, %c0_107, %c0_108] : memref<2x1x32xf32, #tpu.memory_space<vmem>>, vector<1x1x32xf32>
    %254 = vector.shape_cast %253 : vector<1x1x32xf32> to vector<1x32xf32>
    %c1_109 = arith.constant 1 : index
    %c0_110 = arith.constant 0 : index
    %c0_111 = arith.constant 0 : index
    %255 = vector.load %arg8[%c1_109, %c0_110, %c0_111] : memref<2x1x32xf32, #tpu.memory_space<vmem>>, vector<1x1x32xf32>
    %256 = vector.shape_cast %255 : vector<1x1x32xf32> to vector<1x32xf32>
    %cst_112 = arith.constant dense<0.000000e+00> : vector<16xf32>
    %257 = vector.multi_reduction <add>, %252, %cst_112 [1] : vector<16x32xf32> to vector<16xf32>
    %258 = vector.shape_cast %257 : vector<16xf32> to vector<16x1xf32>
    %cst_113 = arith.constant 3.200000e+01 : f32
    %259 = vector.broadcast %cst_113 : f32 to vector<16x1xf32>
    %260 = arith.divf %258, %259 : vector<16x1xf32>
    %261 = vector.broadcast %260 : vector<16x1xf32> to vector<16x32xf32>
    %262 = arith.subf %252, %261 : vector<16x32xf32>
    %263 = arith.mulf %262, %262 : vector<16x32xf32>
    %cst_114 = arith.constant dense<0.000000e+00> : vector<16xf32>
    %264 = vector.multi_reduction <add>, %263, %cst_114 [1] : vector<16x32xf32> to vector<16xf32>
    %265 = vector.shape_cast %264 : vector<16xf32> to vector<16x1xf32>
    %cst_115 = arith.constant 3.200000e+01 : f32
    %266 = vector.broadcast %cst_115 : f32 to vector<16x1xf32>
    %267 = arith.divf %265, %266 : vector<16x1xf32>
    %268 = vector.broadcast %260 : vector<16x1xf32> to vector<16x32xf32>
    %269 = arith.subf %252, %268 : vector<16x32xf32>
    %cst_116 = arith.constant 9.99999974E-6 : f32
    %270 = vector.broadcast %cst_116 : f32 to vector<16x1xf32>
    %271 = arith.addf %267, %270 : vector<16x1xf32>
    %272 = math.rsqrt %271 : vector<16x1xf32>
    %273 = vector.broadcast %272 : vector<16x1xf32> to vector<16x32xf32>
    %274 = arith.mulf %269, %273 : vector<16x32xf32>
    %275 = vector.broadcast %254 : vector<1x32xf32> to vector<16x32xf32>
    %276 = arith.mulf %274, %275 : vector<16x32xf32>
    %277 = vector.broadcast %256 : vector<1x32xf32> to vector<16x32xf32>
    %278 = arith.addf %276, %277 : vector<16x32xf32>
    %c1_117 = arith.constant 1 : index
    %c0_118 = arith.constant 0 : index
    %c0_119 = arith.constant 0 : index
    %279 = vector.load %arg9[%c1_117, %c0_118, %c0_119] : memref<2x32x64xf32, #tpu.memory_space<vmem>>, vector<1x32x64xf32>
    %280 = vector.shape_cast %279 : vector<1x32x64xf32> to vector<32x64xf32>
    %cst_120 = arith.constant dense<0.000000e+00> : vector<16x64xf32>
    %281 = tpu.matmul %278, %280, %cst_120 {dimension_numbers = #tpu.dot_dimension_numbers<[1], [0], [0], [1], [0, 0, 1, 1], [], []>} : vector<16x32xf32>, vector<32x64xf32>, vector<16x64xf32> -> vector<16x64xf32>
    %c1_121 = arith.constant 1 : index
    %c0_122 = arith.constant 0 : index
    %c0_123 = arith.constant 0 : index
    %282 = vector.load %arg10[%c1_121, %c0_122, %c0_123] : memref<2x1x64xf32, #tpu.memory_space<vmem>>, vector<1x1x64xf32>
    %283 = vector.shape_cast %282 : vector<1x1x64xf32> to vector<1x64xf32>
    %284 = vector.broadcast %283 : vector<1x64xf32> to vector<16x64xf32>
    %285 = arith.addf %281, %284 : vector<16x64xf32>
    %cst_124 = arith.constant 0.000000e+00 : f32
    %286 = vector.broadcast %cst_124 : f32 to vector<16x64xf32>
    %287 = arith.maximumf %285, %286 : vector<16x64xf32>
    %c1_125 = arith.constant 1 : index
    %c0_126 = arith.constant 0 : index
    %c0_127 = arith.constant 0 : index
    %288 = vector.load %arg11[%c1_125, %c0_126, %c0_127] : memref<2x64x32xf32, #tpu.memory_space<vmem>>, vector<1x64x32xf32>
    %289 = vector.shape_cast %288 : vector<1x64x32xf32> to vector<64x32xf32>
    %cst_128 = arith.constant dense<0.000000e+00> : vector<16x32xf32>
    %290 = tpu.matmul %287, %289, %cst_128 {dimension_numbers = #tpu.dot_dimension_numbers<[1], [0], [0], [1], [0, 0, 1, 1], [], []>} : vector<16x64xf32>, vector<64x32xf32>, vector<16x32xf32> -> vector<16x32xf32>
    %c1_129 = arith.constant 1 : index
    %c0_130 = arith.constant 0 : index
    %c0_131 = arith.constant 0 : index
    %291 = vector.load %arg12[%c1_129, %c0_130, %c0_131] : memref<2x1x32xf32, #tpu.memory_space<vmem>>, vector<1x1x32xf32>
    %292 = vector.shape_cast %291 : vector<1x1x32xf32> to vector<1x32xf32>
    %293 = vector.broadcast %292 : vector<1x32xf32> to vector<16x32xf32>
    %294 = arith.addf %290, %293 : vector<16x32xf32>
    %295 = arith.addf %278, %294 : vector<16x32xf32>
    %c1_132 = arith.constant 1 : index
    %c0_133 = arith.constant 0 : index
    %c0_134 = arith.constant 0 : index
    %296 = vector.load %arg13[%c1_132, %c0_133, %c0_134] : memref<2x1x32xf32, #tpu.memory_space<vmem>>, vector<1x1x32xf32>
    %297 = vector.shape_cast %296 : vector<1x1x32xf32> to vector<1x32xf32>
    %c1_135 = arith.constant 1 : index
    %c0_136 = arith.constant 0 : index
    %c0_137 = arith.constant 0 : index
    %298 = vector.load %arg14[%c1_135, %c0_136, %c0_137] : memref<2x1x32xf32, #tpu.memory_space<vmem>>, vector<1x1x32xf32>
    %299 = vector.shape_cast %298 : vector<1x1x32xf32> to vector<1x32xf32>
    %cst_138 = arith.constant dense<0.000000e+00> : vector<16xf32>
    %300 = vector.multi_reduction <add>, %295, %cst_138 [1] : vector<16x32xf32> to vector<16xf32>
    %301 = vector.shape_cast %300 : vector<16xf32> to vector<16x1xf32>
    %cst_139 = arith.constant 3.200000e+01 : f32
    %302 = vector.broadcast %cst_139 : f32 to vector<16x1xf32>
    %303 = arith.divf %301, %302 : vector<16x1xf32>
    %304 = vector.broadcast %303 : vector<16x1xf32> to vector<16x32xf32>
    %305 = arith.subf %295, %304 : vector<16x32xf32>
    %306 = arith.mulf %305, %305 : vector<16x32xf32>
    %cst_140 = arith.constant dense<0.000000e+00> : vector<16xf32>
    %307 = vector.multi_reduction <add>, %306, %cst_140 [1] : vector<16x32xf32> to vector<16xf32>
    %308 = vector.shape_cast %307 : vector<16xf32> to vector<16x1xf32>
    %cst_141 = arith.constant 3.200000e+01 : f32
    %309 = vector.broadcast %cst_141 : f32 to vector<16x1xf32>
    %310 = arith.divf %308, %309 : vector<16x1xf32>
    %311 = vector.broadcast %303 : vector<16x1xf32> to vector<16x32xf32>
    %312 = arith.subf %295, %311 : vector<16x32xf32>
    %cst_142 = arith.constant 9.99999974E-6 : f32
    %313 = vector.broadcast %cst_142 : f32 to vector<16x1xf32>
    %314 = arith.addf %310, %313 : vector<16x1xf32>
    %315 = math.rsqrt %314 : vector<16x1xf32>
    %316 = vector.broadcast %315 : vector<16x1xf32> to vector<16x32xf32>
    %317 = arith.mulf %312, %316 : vector<16x32xf32>
    %318 = vector.broadcast %297 : vector<1x32xf32> to vector<16x32xf32>
    %319 = arith.mulf %317, %318 : vector<16x32xf32>
    %320 = vector.broadcast %299 : vector<1x32xf32> to vector<16x32xf32>
    %321 = arith.addf %319, %320 : vector<16x32xf32>
    %c0_143 = arith.constant 0 : index
    %c0_144 = arith.constant 0 : index
    %322 = vector.load %arg2[%c0_143, %c0_144] : memref<2x16xf32, #tpu.memory_space<vmem>>, vector<2x16xf32>
    %cst_145 = arith.constant dense<0.000000e+00> : vector<2x32xf32>
    %323 = tpu.matmul %322, %321, %cst_145 {dimension_numbers = #tpu.dot_dimension_numbers<[1], [0], [0], [1], [0, 0, 1, 1], [], []>} : vector<2x16xf32>, vector<16x32xf32>, vector<2x32xf32> -> vector<2x32xf32>
    %c0_146 = arith.constant 0 : index
    %c0_147 = arith.constant 0 : index
    %324 = vector.load %arg15[%c0_146, %c0_147] : memref<32x32xf32, #tpu.memory_space<vmem>>, vector<32x32xf32>
    %cst_148 = arith.constant dense<0.000000e+00> : vector<2x32xf32>
    %325 = tpu.matmul %323, %324, %cst_148 {dimension_numbers = #tpu.dot_dimension_numbers<[1], [0], [0], [1], [0, 0, 1, 1], [], []>} : vector<2x32xf32>, vector<32x32xf32>, vector<2x32xf32> -> vector<2x32xf32>
    %c0_149 = arith.constant 0 : index
    %c0_150 = arith.constant 0 : index
    %326 = vector.load %arg16[%c0_149, %c0_150] : memref<1x32xf32, #tpu.memory_space<vmem>>, vector<1x32xf32>
    %327 = vector.broadcast %326 : vector<1x32xf32> to vector<2x32xf32>
    %328 = arith.addf %325, %327 : vector<2x32xf32>
    %329 = vector.extract_strided_slice %328 {offsets = [0, 0], sizes = [2, 16], strides = [1, 1]} : vector<2x32xf32> to vector<2x16xf32>
    %330 = vector.extract_strided_slice %328 {offsets = [0, 16], sizes = [2, 16], strides = [1, 1]} : vector<2x32xf32> to vector<2x16xf32>
    %c0_151 = arith.constant 0 : index
    %c0_152 = arith.constant 0 : index
    %331 = vector.load %arg17[%c0_151, %c0_152] : memref<2x16xf32, #tpu.memory_space<vmem>>, vector<2x16xf32>
    %cst_153 = arith.constant 5.000000e-01 : f32
    %332 = vector.broadcast %cst_153 : f32 to vector<2x16xf32>
    %333 = arith.mulf %332, %330 : vector<2x16xf32>
    %334 = math.exp %333 : vector<2x16xf32>
    %335 = arith.mulf %331, %334 : vector<2x16xf32>
    %336 = arith.addf %335, %329 : vector<2x16xf32>
    %337 = tpu.concatenate %329, %330, %336 in 1 : vector<2x16xf32>, vector<2x16xf32>, vector<2x16xf32> -> vector<2x48xf32>
    %c0_154 = arith.constant 0 : index
    %c0_155 = arith.constant 0 : index
    %338 = vector.load %arg18[%c0_154, %c0_155] : memref<2x48xf32, #tpu.memory_space<vmem>>, vector<2x48xf32>
    tpu.vector_store %arg18[%c0_154, %c0_155], %337 {strides = array<i32>} : memref<2x48xf32, #tpu.memory_space<vmem>>, vector<2x48xf32>,
    return
  }
}

</mosaic_0001>

<bundles_post_ra>
// kernel: latent_encoder_forward.1
= control target key start
LH: loop header
LB: loop body
LE: loop exit
PB: predicated region body
PF: predicated region fallthrough
CT: control target
= control target key end

     0   :  { %s2581_s0 = inlined_call_operand.vmem [shape: f32[16,32], index: 0, kind: input, shape index: {}]   ;;  %s2582_s1 = inlined_call_operand.vmem [shape: f32[16,16], index: 1, kind: input, shape index: {}]   ;;  %s2583_s2 = inlined_call_operand.vmem [shape: f32[2,16], index: 2, kind: input, shape index: {}]   ;;  %s2584_s3 = inlined_call_operand.vmem [shape: f32[2,32,96], index: 3, kind: input, shape index: {}]   ;;  %s2585_s4 = inlined_call_operand.vmem [shape: f32[2,1,96], index: 4, kind: input, shape index: {}]   ;;  %s2586_s5 = inlined_call_operand.vmem [shape: f32[2,32,32], index: 5, kind: input, shape index: {}]   ;;  %s2587_s6 = inlined_call_operand.vmem [shape: f32[2,1,32], index: 6, kind: input, shape index: {}]   ;;  %s2588_s7 = inlined_call_operand.vmem [shape: f32[2,1,32], index: 7, kind: input, shape index: {}]   ;;  %s2589_s8 = inlined_call_operand.vmem [shape: f32[2,1,32], index: 8, kind: input, shape index: {}]   ;;  %s2590_s9 = inlined_call_operand.vmem [shape: f32[2,32,64], index: 9, kind: input, shape index: {}]   ;;  %s2591_s10 = inlined_call_operand.hbm [shape: f32[2,1,64], index: 10, kind: input, shape index: {}]   ;;  %s2592_s11 = inlined_call_operand.vmem [shape: f32[2,64,32], index: 11, kind: input, shape index: {}]   ;;  %s2593_s12 = inlined_call_operand.vmem [shape: f32[2,1,32], index: 12, kind: input, shape index: {}]   ;;  %s2594_s13 = inlined_call_operand.vmem [shape: f32[2,1,32], index: 13, kind: input, shape index: {}]   ;;  %s2595_s14 = inlined_call_operand.hbm [shape: f32[2,1,32], index: 14, kind: input, shape index: {}]   ;;  %s2596_s15 = inlined_call_operand.hbm [shape: f32[32,32], index: 15, kind: input, shape index: {}]   ;;  %s2597_s16 = inlined_call_operand.hbm [shape: f32[1,32], index: 16, kind: input, shape index: {}]   ;;  %s2598_s17 = inlined_call_operand.vmem [shape: f32[2,16], index: 17, kind: input, shape index: {}]   ;;  %s2599_s18 = inlined_call_operand.vmem [shape: f32[2,48], index: 18, kind: output, shape index: {}]  }
   0x1   :  { %2607 = sst [smem:[#allocation12_spill]] %s2581_s0 }
   0x2   :  { %2608 = sst [smem:[#allocation13_spill]] %s2582_s1 }
   0x3   :  { %2609 = sst [smem:[#allocation14_spill]] %s2583_s2 }
   0x4   :  { %23 = vsyncpa [#allocation3], 0 }
   0x5   :  { %24 = vsyncpa [#allocation5], 0 }
   0x6   :  { %25 = vsyncpa [#allocation8], 0  ;;  %s69_s29 = sshll.u32 %s2595_s14, 4  ;;  %s1980_s30 = smov [#allocation4]   ;;  %s70_s29 = int_to_ptr.hbm [resolvable:$true] %s69_s29 }
   0x7   :  { %s71_s0 = sshll.u32 %s1980_s30, 4  ;;  %s50_s20 = sshll.u32 %s2591_s10, 4  ;;  %s72_s0 = int_to_ptr.vmem [resolvable:$true] %s71_s0  ;;  %s51_s20 = int_to_ptr.hbm [resolvable:$true] %s50_s20 }
   0x8   :  { %s1981_s21 = smov 16   ;;  %s1982_s22 = smov 1  }
   0x9   :  { %77 = dma.hbm_to_vmem [thread:$0]  %s70_s29, 32, %s72_s0, [#allocation5], %s1981_s21, %s1981_s21, %s1982_s22  }
   0xa   :  { %s1983_s2 = smov [#allocation2]   ;;  %s82_s14 = sshll.u32 %s2596_s15, 4  ;;  %s83_s14 = int_to_ptr.hbm [resolvable:$true] %s82_s14 }
   0xb   :  { %s52_s23 = sshll.u32 %s1983_s2, 4  ;;  %s1984_s26 = smov [#allocation6]   ;;  %s53_s23 = int_to_ptr.vmem [resolvable:$true] %s52_s23 }
   0xc   :  { %58 = dma.hbm_to_vmem [thread:$0]  %s51_s20, 32, %s53_s23, [#allocation3], %s1981_s21, %s1981_s21, %s1982_s22  }
   0xd   :  { %s84_s27 = sshll.u32 %s1984_s26, 4  ;;  %s96_s30 = sshll.u32 %s2597_s16, 4  ;;  %s85_s27 = int_to_ptr.vmem [resolvable:$true] %s84_s27  ;;  %s97_s30 = int_to_ptr.hbm [resolvable:$true] %s96_s30 }
   0xe   :  { %s1985_s29 = smov 128   ;;  %s2603_s0 = smov 8  }
   0xf   :  { %90 = dma.hbm_to_vmem [thread:$0]  %s83_s14, 512, %s85_s27, [#allocation5], %s1985_s29, %s1985_s29, %s2603_s0  }
  0x10   :  { %s1987_s19 = smov [#allocation7]  }
  0x11   :  { %s98_s1 = sshll.u32 %s1987_s19, 4  ;;  %s99_s1 = int_to_ptr.vmem [resolvable:$true] %s98_s1 }
  0x12   :  { %101 = dma.hbm_to_vmem [thread:$0]  %s97_s30, 16, %s99_s1, [#allocation8]  }
  0x13   :  { %1974 = dma.done.wait [#allocation3], 32  }
  0x14   :  { %1975 = vsyncadd [#allocation3], 4294967264 }
  0x15   :  { %1976 = dma.done.wait [#allocation5], 544  }
  0x16   :  { %1977 = vsyncadd [#allocation5], 4294966752 }
  0x17   :  { %1978 = dma.done.wait [#allocation8], 16  }
  0x18   :  { %1979 = vsyncadd [#allocation8], 4294967280  ;;  %v127_v0 = vld [vmem:[%s2584_s3 + $0x18] sm:$0xff]  ;;  %v126_v1 = vld [vmem:[%s2584_s3 + $0x10] sm:$0xff]  ;;  %vm132_vm0 = vcmask 261120   ;;  %s2610_s27 = sld [smem:[#allocation12_spill]] }
  0x19   :  { %151 = vmatpush.msra.mxu0 %v127_v0  ;;  %v125_v2 = vld [vmem:[%s2584_s3 + $0x8] sm:$0xff]  ;;  %v124_v3 = vld [vmem:[%s2584_s3] sm:$0xff]  ;;  %s1988_s19 = smov 120   ;;  %s1989_s1 = smov 88   ;;  %vm168_vm1 = vcmask 64512   ;;  %vm204_vm2 = vcmask 130048  }
  0x1a   :  { %v1777_v6 = vld [vmem:[%s2585_s4] ss:$0 sm:$0xff]  ;;  %s1990_s15 = smov 96   ;;  %s1991_s20 = smov 104   ;;  %vm590_vm3 = vcmask 195584   ;;  %vm746_vm11 = vcmask 523264  }
  0x1b   :  { %152 = vmatpush.msra.mxu0 %v126_v1  ;;  %s1992_s16 = smov 72   ;;  %s1993_s22 = smov 80  }
  0x1c   :  { %s1994_s2 = smov 112   ;;  %s2611_s25 = sld [smem:[#allocation13_spill]] }
  0x1d   :  { %153 = vmatpush.msra.mxu0 %v125_v2  ;;  %s1996_s10 = smov 40   ;;  %s1997_s28 = smov 56  }
  0x1e   :  { %v2129_v4 = vld [vmem:[%s2610_s27] sm:$0xff]  ;;  %v2136_v5 = vld [vmem:[%s2610_s27 + $0x8] sm:$0xff]  ;;  %s1995_s27 = smov 64   ;;  %s2602_s30 = smov 48  }
  0x1f   :  { %154 = vmatpush.msra.mxu0 %v124_v3  ;;  %s2605_s29 = smov 24  }
  0x20   :  { %1623 = vmatmul.msk.f32.vlgmr.msra.gmra.mxu0 %vm132_vm0, %v2129_v4 }
  0x22   :  { %v2196_v26 = vld [vmem:[%s2611_s25] sm:$0xff]  ;;  %v2207_v42 = vld [vmem:[%s2611_s25 + $0x8] sm:$0xff] }
  0x28   :  { %1624 = vmatmul.msk.f32.gmra.mxu0 %vm132_vm0, %v2136_v5 }
  0x9d   :  { %v156_v7 = vpop.f32.mrf.mxu0 }
  0x9e   :  { %v2143_v8 = vadd.f32 %v1777_v6, %v156_v7 }
  0xa0   :  { %262 = vrot.lane.b32.xlu2 %v2143_v8, %s1988_s19 }
  0xa5   :  { %v159_v9 = vpop.f32.mrf.mxu0 }
  0xa6   :  { %v2147_v10 = vadd.f32 %v1777_v6, %v159_v9 }
  0xa8   :  { %268 = vrot.lane.b32.xlu1 %v2147_v10, %s1989_s1  ;;  %166 = vrot.lane.b32.xlu0 %v2147_v10, %s1990_s15  ;;  %v1737_v59 = vpack.i.bf16 %v2143_v8, %v2147_v10 }
  0xa9   :  { %264 = vrot.lane.b32.xlu2 %v2147_v10, %s1988_s19 }
  0xb0   :  { %266 = vrot.lane.b32.xlu1 %v2143_v8, %s1989_s1  ;;  %164 = vrot.lane.b32.xlu0 %v2143_v8, %s1990_s15 }
  0xb1   :  { %462 = vrot.lane.b32.xlu2 %v2143_v8, %s1991_s20 }
  0xb8   :  { %466 = vrot.lane.b32.xlu1 %v2143_v8, %s1992_s16  ;;  %468 = vrot.lane.b32.xlu0 %v2147_v10, %s1992_s16 }
  0xb9   :  { %464 = vrot.lane.b32.xlu2 %v2147_v10, %s1991_s20 }
  0xc0   :  { %366 = vrot.lane.b32.xlu1 %v2143_v8, %s1993_s22  ;;  %368 = vrot.lane.b32.xlu0 %v2147_v10, %s1993_s22 }
  0xc8   :  { %364 = vrot.lane.b32.xlu1 %v2147_v10, %s1994_s2  ;;  %362 = vrot.lane.b32.xlu0 %v2143_v8, %s1994_s2 }
  0xfa   :  { %v263_v13 = vpop.permute.xlu2 %262 }
 0x103   :  { %v265_v16 = vpop.permute.xlu2 %264 }
 0x10b   :  { %v463_v20 = vpop.permute.xlu2 %462 }
 0x113   :  { %v465_v23 = vpop.permute.xlu2 %464 }
 0x11a   :  { %v269_v11 = vpop.permute.xlu1 %268  ;;  %v167_v12 = vpop.permute.xlu0 %166 }
 0x11b   :  { %1625 = vmatpush.xpose.msk.msra.mxu1 %vm168_vm1, %v167_v12  ;;  %1631 = vmatpush.xpose.msk.msra.mxu3 %vm168_vm1, %v269_v11 }
 0x122   :  { %v267_v14 = vpop.permute.xlu1 %266  ;;  %v165_v15 = vpop.permute.xlu0 %164 }
 0x123   :  { %1626 = vmatpush.xpose.msk.msra.mxu1 %vm168_vm1, %v165_v15  ;;  %1632 = vmatpush.xpose.msk.msra.mxu3 %vm168_vm1, %v267_v14 }
 0x126   :  { %1627 = vmatmul.msk.f32.vlgmr.msra.gmra.mxu1 %vm168_vm1, %v2143_v8  ;;  %1633 = vmatmul.msk.f32.vlgmr.msra.gmra.mxu3 %vm168_vm1, %v263_v13 }
 0x12a   :  { %v469_v17 = vpop.permute.xlu0 %468  ;;  %v467_v18 = vpop.permute.xlu1 %466 }
 0x12b   :  { %1643 = vmatpush.xpose.msk.msrb.mxu3 %vm168_vm1, %v469_v17 }
 0x12e   :  { %1628 = vmatmul.msk.f32.gmra.mxu1 %vm168_vm1, %v2147_v10  ;;  %1634 = vmatmul.msk.f32.gmra.mxu3 %vm168_vm1, %v265_v16 }
 0x12f   :  { %1644 = vmatpush.xpose.msk.msrb.mxu3 %vm168_vm1, %v467_v18 }
 0x132   :  { %v369_v19 = vpop.permute.xlu0 %368  ;;  %v367_v21 = vpop.permute.xlu1 %366 }
 0x133   :  { %1637 = vmatpush.xpose.msk.msrb.mxu0 %vm168_vm1, %v369_v19 }
 0x136   :  { %1645 = vmatmul.msk.f32.vlgmr.msrb.gmra.mxu3 %vm168_vm1, %v463_v20 }
 0x137   :  { %1638 = vmatpush.xpose.msk.msrb.mxu0 %vm168_vm1, %v367_v21 }
 0x13a   :  { %v363_v22 = vpop.permute.xlu0 %362  ;;  %v365_v24 = vpop.permute.xlu1 %364 }
 0x13b   :  { %1639 = vmatmul.msk.f32.vlgmr.msrb.gmra.mxu0 %vm168_vm1, %v363_v22 }
 0x13e   :  { %1646 = vmatmul.msk.f32.gmra.mxu3 %vm168_vm1, %v465_v23 }
 0x143   :  { %1640 = vmatmul.msk.f32.gmra.mxu0 %vm168_vm1, %v365_v24 }
 0x1a3   :  { %v194_v25 = vpop.f32.mrf.mxu1 }
 0x1a4   :  { %v200_v27 = vmul.f32 0.35355338, %v194_v25 }
 0x1a6   :  { %v202_v28 = vadd.f32 %v200_v27, %v2196_v26 }
 0x1a8   :  { %v205_v29 = vsel %vm204_vm2, %v202_v28, -inf }
 0x1a9   :  { %v295_v30 = vpop.f32.mrf.mxu3  ;;  %206 = vmax.xlane.f32.xlu2 %v205_v29 }
 0x1aa   :  { %v301_v31 = vmul.f32 0.35355338, %v295_v30 }
 0x1ab   :  { %v197_v38 = vpop.f32.mrf.mxu1 }
 0x1ac   :  { %v303_v32 = vadd.f32 %v301_v31, %v2196_v26  ;;  %v201_v40 = vmul.f32 0.35355338, %v197_v38 }
 0x1ae   :  { %v305_v33 = vsel %vm204_vm2, %v303_v32, -inf  ;;  %v203_v46 = vadd.f32 %v201_v40, %v2207_v42 }
 0x1af   :  { %306 = vmax.xlane.f32.xlu1 %v305_v33 }
 0x1b0   :  { %v208_v51 = vsel %vm204_vm2, %v203_v46, -inf }
 0x1b1   :  { %v298_v34 = vpop.f32.mrf.mxu3 }
 0x1b2   :  { %v302_v50 = vmul.f32 0.35355338, %v298_v34 }
 0x1b4   :  { %v304_v54 = vadd.f32 %v302_v50, %v2207_v42 }
 0x1b6   :  { %v308_v56 = vsel %vm204_vm2, %v304_v54, -inf }
 0x1b8   :  { %v395_v35 = vpop.f32.mrf.mxu0 }
 0x1b9   :  { %v401_v36 = vmul.f32 0.35355338, %v395_v35  ;;  %v495_v37 = vpop.f32.mrf.mxu3 }
 0x1ba   :  { %v501_v55 = vmul.f32 0.35355338, %v495_v37 }
 0x1bb   :  { %v403_v39 = vadd.f32 %v401_v36, %v2196_v26 }
 0x1bc   :  { %v503_v57 = vadd.f32 %v501_v55, %v2196_v26 }
 0x1bd   :  { %v405_v41 = vsel %vm204_vm2, %v403_v39, -inf }
 0x1be   :  { %406 = vmax.xlane.f32.xlu0 %v405_v41  ;;  %v505_v58 = vsel %vm204_vm2, %v503_v57, -inf }
 0x1c0   :  { %v398_v43 = vpop.f32.mrf.mxu0 }
 0x1c1   :  { %v402_v44 = vmul.f32 0.35355338, %v398_v43  ;;  %v498_v45 = vpop.f32.mrf.mxu3 }
 0x1c2   :  { %v502_v47 = vmul.f32 0.35355338, %v498_v45 }
 0x1c3   :  { %v2211_v48 = vadd.f32 %v402_v44, %v2207_v42 }
 0x1c4   :  { %v2214_v49 = vadd.f32 %v502_v47, %v2207_v42 }
 0x1c5   :  { %v408_v52 = vsel %vm204_vm2, %v2211_v48, -inf }
 0x1c6   :  { %209 = vmax.xlane.f32.xlu0 %v208_v51  ;;  %409 = vmax.xlane.f32.xlu2 %v408_v52  ;;  %v508_v53 = vsel %vm204_vm2, %v2214_v49, -inf }
 0x1c7   :  { %509 = vmax.xlane.f32.xlu1 %v508_v53 }
 0x1ce   :  { %309 = vmax.xlane.f32.xlu2 %v308_v56 }
 0x1d6   :  { %506 = vmax.xlane.f32.xlu2 %v505_v58 }
 0x1e0   :  { %1738 = vrot.lane.b32.xlu1 %v1737_v59, %s1995_s27 }
 0x21c   :  { %v207_v60 = vpop.xlane.xlu2 %206 }
 0x21d   :  { %v211_v61 = vsub.f32 %v202_v28, %v207_v60 }
 0x21f   :  { %v213_v62 = vmul.f32 1.442695, %v211_v61 }
 0x221   :  { %1794 = vpow2.f32 %v213_v62 }
 0x222   :  { %v307_v63 = vpop.xlane.xlu1 %306 }
 0x223   :  { %v311_v0 = vsub.f32 %v303_v32, %v307_v63 }
 0x225   :  { %v313_v1 = vmul.f32 1.442695, %v311_v0 }
 0x227   :  { %v1795_v2 = vpop.eup %1794  ;;  %1796 = vpow2.f32 %v313_v1 }
 0x228   :  { %v217_v3 = vsel %vm204_vm2, %v1795_v2, 0.0 }
 0x229   :  { %218 = vadd.xlane.f32.xlu0 %v217_v3 }
 0x22d   :  { %v2229_v6 = vpop.eup %1796 }
 0x22e   :  { %v317_v7 = vsel %vm204_vm2, %v2229_v6, 0.0 }
 0x231   :  { %v407_v8 = vpop.xlane.xlu0 %406  ;;  %318 = vadd.xlane.f32.xlu0 %v317_v7 }
 0x232   :  { %v411_v9 = vsub.f32 %v403_v39, %v407_v8 }
 0x234   :  { %v413_v10 = vmul.f32 1.442695, %v411_v9 }
 0x236   :  { %1798 = vpow2.f32 %v413_v10 }
 0x239   :  { %v210_v11 = vpop.xlane.xlu0 %209  ;;  %v410_v19 = vpop.xlane.xlu2 %409 }
 0x23a   :  { %v212_v12 = vsub.f32 %v203_v46, %v210_v11  ;;  %v510_v18 = vpop.xlane.xlu1 %509  ;;  %v412_v40 = vsub.f32 %v2211_v48, %v410_v19 }
 0x23b   :  { %v512_v33 = vsub.f32 %v2214_v49, %v510_v18 }
 0x23c   :  { %v2233_v13 = vpop.eup %1798  ;;  %v215_v14 = vmul.f32 1.442695, %v212_v12  ;;  %v415_v43 = vmul.f32 1.442695, %v412_v40 }
 0x23d   :  { %v417_v15 = vsel %vm204_vm2, %v2233_v13, 0.0  ;;  %v515_v35 = vmul.f32 1.442695, %v512_v33 }
 0x23e   :  { %1800 = vpow2.f32 %v215_v14  ;;  %418 = vadd.xlane.f32.xlu1 %v417_v15 }
 0x241   :  { %v310_v23 = vpop.xlane.xlu2 %309 }
 0x242   :  { %v312_v24 = vsub.f32 %v304_v54, %v310_v23  ;;  %v595_v23 = vld [vmem:[%s2586_s5 + $0x10] sm:$0xff] }
 0x244   :  { %v1801_v16 = vpop.eup %1800  ;;  %v315_v25 = vmul.f32 1.442695, %v312_v24  ;;  %v594_v24 = vld [vmem:[%s2586_s5 + $0x8] sm:$0xff] }
 0x245   :  { %1748 = vrot.lane.b32.xlu0 %v1737_v59, %s1996_s10  ;;  %v220_v17 = vsel %vm204_vm2, %v1801_v16, 0.0 }
 0x246   :  { %221 = vadd.xlane.f32.xlu2 %v220_v17  ;;  %1802 = vpow2.f32 %v315_v25  ;;  %v593_v25 = vld [vmem:[%s2586_s5] sm:$0xff] }
 0x249   :  { %v507_v27 = vpop.xlane.xlu2 %506 }
 0x24a   :  { %v511_v28 = vsub.f32 %v503_v57, %v507_v27 }
 0x24c   :  { %v513_v29 = vmul.f32 1.442695, %v511_v28  ;;  %v1803_v30 = vpop.eup %1802 }
 0x24d   :  { %v320_v31 = vsel %vm204_vm2, %v1803_v30, 0.0 }
 0x24e   :  { %1804 = vpow2.f32 %v513_v29 }
 0x24f   :  { %1806 = vpow2.f32 %v515_v35 }
 0x252   :  { %v1739_v20 = vpop.permute.xlu1 %1738 }
 0x253   :  { %v1740_v21 = vunpack.i.l.bf16 %v1739_v20  ;;  %v1741_v22 = vunpack.i.h.bf16 %v1739_v20 }
 0x254   :  { %v1805_v32 = vpop.eup %1804 }
 0x255   :  { %253 = vmatpush.msra.mxu2 %v1740_v21  ;;  %v517_v34 = vsel %vm204_vm2, %v1805_v32, 0.0  ;;  %v1807_v36 = vpop.eup %1806 }
 0x256   :  { %v520_v37 = vsel %vm204_vm2, %v1807_v36, 0.0 }
 0x257   :  { %254 = vmatpush.msra.mxu2 %v1741_v22  ;;  %v596_v22 = vld [vmem:[%s2586_s5 + $0x18] sm:$0xff] }
 0x258   :  { %619 = vmatpush.msra.mxu0 %v596_v22  ;;  %v740_v22 = vld [vmem:[%s2592_s11 + $0x30] sm:$0xff] }
 0x25a   :  { %620 = vmatpush.msra.mxu0 %v595_v23  ;;  %v739_v23 = vld [vmem:[%s2592_s11 + $0x28] sm:$0xff] }
 0x25c   :  { %621 = vmatpush.msra.mxu0 %v594_v24 }
 0x25e   :  { %1743 = vrot.lane.b32.xlu2 %v1737_v59, %s1997_s28  ;;  %622 = vmatpush.msra.mxu0 %v593_v25 }
 0x26f   :  { %321 = vadd.xlane.f32.xlu0 %v320_v31 }
 0x277   :  { %518 = vadd.xlane.f32.xlu0 %v517_v34 }
 0x287   :  { %521 = vadd.xlane.f32.xlu2 %v520_v37 }
 0x28b   :  { %1753 = vrot.lane.b32.xlu0 %v1737_v59, %s2602_s30 }
 0x29c   :  { %v219_v38 = vpop.xlane.xlu0 %218 }
 0x29d   :  { %1808 = vrcp.f32 %v219_v38 }
 0x29e   :  { %1810 = vpow2.f32 %v415_v43 }
 0x2a3   :  { %v1809_v39 = vpop.eup %1808 }
 0x2a4   :  { %v225_v41 = vmul.f32 %v1809_v39, %v1795_v2  ;;  %v1811_v44 = vpop.eup %1810  ;;  %v319_v47 = vpop.xlane.xlu0 %318  ;;  %v1778_v39 = vld [vmem:[%s2587_s6] ss:$0 sm:$0xff] }
 0x2a5   :  { %v420_v45 = vsel %vm204_vm2, %v1811_v44, 0.0 }
 0x2a6   :  { %1629 = vmatmul.msk.f32.vlgmr.msra.gmra.mxu2 %vm204_vm2, %v225_v41 }
 0x2b1   :  { %v419_v0 = vpop.xlane.xlu1 %418 }
 0x2b5   :  { %421 = vadd.xlane.f32.xlu0 %v420_v45 }
 0x2b7   :  { %v1749_v52 = vpop.permute.xlu0 %1748 }
 0x2b8   :  { %v1750_v54 = vunpack.i.l.bf16 %v1749_v52  ;;  %v1751_v56 = vunpack.i.h.bf16 %v1749_v52 }
 0x2b9   :  { %v222_v46 = vpop.xlane.xlu2 %221 }
 0x2ba   :  { %1812 = vrcp.f32 %v222_v46 }
 0x2bb   :  { %1814 = vrcp.f32 %v319_v47 }
 0x2c0   :  { %v1813_v49 = vpop.eup %1812 }
 0x2c1   :  { %v1744_v50 = vpop.permute.xlu2 %1743  ;;  %v226_v51 = vmul.f32 %v1813_v49, %v1801_v16  ;;  %v1815_v55 = vpop.eup %1814 }
 0x2c2   :  { %v1745_v53 = vunpack.i.l.bf16 %v1744_v50  ;;  %v1746_v48 = vunpack.i.h.bf16 %v1744_v50  ;;  %v325_v57 = vmul.f32 %v1815_v55, %v2229_v6  ;;  %v2000_v50 = vmov 32.0  }
 0x2c3   :  { %1630 = vmatmul.msk.f32.gmra.mxu2 %vm204_vm2, %v226_v51 }
 0x2c4   :  { %353 = vmatpush.msrb.mxu2 %v1745_v53 }
 0x2c6   :  { %354 = vmatpush.msrb.mxu2 %v1746_v48 }
 0x2c8   :  { %553 = vmatpush.msra.mxu2 %v1750_v54 }
 0x2ca   :  { %554 = vmatpush.msra.mxu2 %v1751_v56 }
 0x2cb   :  { %1635 = vmatmul.msk.f32.vlgmr.msrb.gmra.mxu2 %vm204_vm2, %v325_v57 }
 0x2e2   :  { %v322_v58 = vpop.xlane.xlu0 %321 }
 0x2e3   :  { %1816 = vrcp.f32 %v322_v58 }
 0x2e9   :  { %v1817_v59 = vpop.eup %1816 }
 0x2ea   :  { %v519_v60 = vpop.xlane.xlu0 %518  ;;  %v326_v61 = vmul.f32 %v1817_v59, %v1803_v30 }
 0x2eb   :  { %1818 = vrcp.f32 %v519_v60 }
 0x2ec   :  { %1636 = vmatmul.msk.f32.gmra.mxu2 %vm204_vm2, %v326_v61  ;;  %1820 = vrcp.f32 %v419_v0  ;;  %v698_v0 = vld [vmem:[%s2590_s9 + $0x18] sm:$0xff] }
 0x2f1   :  { %v1819_v62 = vpop.eup %1818 }
 0x2f2   :  { %v525_v63 = vmul.f32 %v1819_v62, %v1805_v32  ;;  %v1821_v3 = vpop.eup %1820 }
 0x2f3   :  { %v425_v9 = vmul.f32 %v1821_v3, %v2233_v13  ;;  %v695_v3 = vld [vmem:[%s2590_s9] sm:$0xff] }
 0x2f4   :  { %1647 = vmatmul.msk.f32.vlgmr.msra.gmra.mxu2 %vm204_vm2, %v525_v63 }
 0x2fa   :  { %v522_v1 = vpop.xlane.xlu2 %521 }
 0x2fb   :  { %1822 = vrcp.f32 %v522_v1  ;;  %v697_v1 = vld [vmem:[%s2590_s9 + $0x10] sm:$0xff] }
 0x2fd   :  { %v1754_v2 = vpop.permute.xlu0 %1753 }
 0x2fe   :  { %v1755_v6 = vunpack.i.l.bf16 %v1754_v2  ;;  %v1756_v7 = vunpack.i.h.bf16 %v1754_v2  ;;  %v696_v2 = vld [vmem:[%s2590_s9 + $0x8] sm:$0xff] }
 0x300   :  { %453 = vmatpush.msrb.mxu1 %v1755_v6 }
 0x301   :  { %v1823_v8 = vpop.eup %1822 }
 0x302   :  { %454 = vmatpush.msrb.mxu1 %v1756_v7  ;;  %v526_v10 = vmul.f32 %v1823_v8, %v1807_v36 }
 0x303   :  { %1641 = vmatmul.msk.f32.vlgmr.msrb.gmra.mxu1 %vm204_vm2, %v425_v9 }
 0x304   :  { %1648 = vmatmul.msk.f32.gmra.mxu2 %vm204_vm2, %v526_v10  ;;  %721 = vmatpush.msra.mxu1 %v698_v0 }
 0x306   :  { %722 = vmatpush.msra.mxu1 %v697_v1 }
 0x308   :  { %723 = vmatpush.msra.mxu1 %v696_v2 }
 0x30a   :  { %724 = vmatpush.msra.mxu1 %v695_v3 }
 0x328   :  { %v422_v11 = vpop.xlane.xlu0 %421 }
 0x329   :  { %1824 = vrcp.f32 %v422_v11  ;;  %v256_v15 = vpop.f32.mrf.mxu2 }
 0x32a   :  { %1826 = vrcp.f32 %v2000_v50 }
 0x32f   :  { %v1825_v12 = vpop.eup %1824 }
 0x330   :  { %v426_v14 = vmul.f32 %v1825_v12, %v1811_v44  ;;  %v1827_v51 = vpop.eup %1826 }
 0x331   :  { %v641_v52 = vmul.f32 32.0, %v1827_v51  ;;  %vm645_vm4 = vweird.f32 %v1827_v51 }
 0x332   :  { %1642 = vmatmul.msk.f32.gmra.mxu1 %vm204_vm2, %v426_v14 }
 0x333   :  { %v642_v53 = vsub.f32 1.0, %v641_v52  ;;  %v1782_v52 = vld [vmem:[%s2593_s12] ss:$0 sm:$0xff] }
 0x335   :  { %v643_v48 = vmul.f32 %v1827_v51, %v642_v53 }
 0x337   :  { %v644_v54 = vadd.f32 %v1827_v51, %v643_v48 }
 0x339   :  { %v2290_v55 = vsel %vm645_vm4, %v1827_v51, %v644_v54 }
 0x346   :  { %v259_v16 = vpop.f32.mrf.mxu2 }
 0x34e   :  { %v356_v17 = vpop.f32.mrf.mxu2 }
 0x34f   :  { %564 = vrot.lane.b32.xlu1 %v356_v17, %s2603_s0 }
 0x36f   :  { %v359_v18 = vpop.f32.mrf.mxu2 }
 0x377   :  { %v556_v19 = vpop.f32.mrf.mxu2 }
 0x378   :  { %580 = vrot.lane.b32.xlu1 %v556_v19, %s2605_s29  ;;  %v1780_v19 = vld [vmem:[%s2589_s8] ss:$0 sm:$0xff] }
 0x380   :  { %v456_v13 = vpop.f32.mrf.mxu1  ;;  %566 = vrot.lane.b32.xlu1 %v359_v18, %s2603_s0 }
 0x381   :  { %572 = vrot.lane.b32.xlu2 %v456_v13, %s1981_s21 }
 0x387   :  { %v559_v20 = vpop.f32.mrf.mxu2 }
 0x389   :  { %582 = vrot.lane.b32.xlu2 %v559_v20, %s2605_s29 }
 0x3af   :  { %v459_v21 = vpop.f32.mrf.mxu1 }
 0x3b0   :  { %574 = vrot.lane.b32.xlu0 %v459_v21, %s1981_s21  ;;  %v741_v21 = vld [vmem:[%s2592_s11 + $0x38] sm:$0xff] }
 0x3b1   :  { %761 = vmatpush.msra.mxu3 %v741_v21 }
 0x3b3   :  { %762 = vmatpush.msra.mxu3 %v740_v22 }
 0x3b5   :  { %763 = vmatpush.msra.mxu3 %v739_v23  ;;  %v1784_v23 = vld [vmem:[#allocation4] ss:$0 sm:$0xff] }
 0x3c1   :  { %v565_v27 = vpop.permute.xlu1 %564 }
 0x3c2   :  { %v586_v29 = vsel %vm168_vm1, %v256_v15, %v565_v27  ;;  %v738_v27 = vld [vmem:[%s2592_s11 + $0x20] sm:$0xff] }
 0x3c3   :  { %764 = vmatpush.msra.mxu3 %v738_v27 }
 0x3db   :  { %v573_v28 = vpop.permute.xlu2 %572 }
 0x3dc   :  { %v588_v30 = vsel %vm204_vm2, %v586_v29, %v573_v28  ;;  %v737_v29 = vld [vmem:[%s2592_s11 + $0x18] sm:$0xff] }
 0x3dd   :  { %765 = vmatpush.msra.mxu3 %v737_v29 }
 0x3e3   :  { %v583_v36 = vpop.permute.xlu2 %582 }
 0x3ea   :  { %v581_v31 = vpop.permute.xlu1 %580 }
 0x3eb   :  { %v591_v32 = vsel %vm590_vm3, %v588_v30, %v581_v31 }
 0x3ec   :  { %1649 = vmatmul.msk.f32.vlgmr.msra.gmra.mxu0 %vm132_vm0, %v591_v32 }
 0x3f2   :  { %v567_v33 = vpop.permute.xlu1 %566 }
 0x3f3   :  { %v587_v34 = vsel %vm168_vm1, %v259_v16, %v567_v33  ;;  %v1779_v16 = vld [vmem:[%s2588_s7] ss:$0 sm:$0xff] }
 0x422   :  { %v575_v35 = vpop.permute.xlu0 %574 }
 0x423   :  { %v589_v37 = vsel %vm204_vm2, %v587_v34, %v575_v35 }
 0x424   :  { %v592_v38 = vsel %vm590_vm3, %v589_v37, %v583_v36 }
 0x425   :  { %1650 = vmatmul.msk.f32.gmra.mxu0 %vm132_vm0, %v592_v38 }
 0x469   :  { %v624_v40 = vpop.f32.mrf.mxu0 }
 0x46a   :  { %v625_v41 = vadd.f32 %v1778_v39, %v624_v40  ;;  %v736_v40 = vld [vmem:[%s2592_s11 + $0x10] sm:$0xff] }
 0x46b   :  { %766 = vmatpush.msra.mxu3 %v736_v40  ;;  %v1785_v40 = vld [vmem:[%s2585_s4 + $0x1] ss:$0 sm:$0xff]  ;;  %s2612_s4 = smov 48  }
 0x46c   :  { %v630_v43 = vadd.f32 %v625_v41, %v2129_v4  ;;  %v735_v41 = vld [vmem:[%s2592_s11 + $0x8] sm:$0xff] }
 0x46d   :  { %767 = vmatpush.msra.mxu3 %v735_v41 }
 0x46e   :  { %v634_v44 = vsel %vm132_vm0, %v630_v43, 0.0 }
 0x46f   :  { %635 = vadd.xlane.f32.xlu1 %v634_v44  ;;  %v1781_v44 = vld [vmem:[#allocation2] ss:$0 sm:$0xff] }
 0x4a2   :  { %v627_v45 = vpop.f32.mrf.mxu0 }
 0x4a3   :  { %v628_v46 = vadd.f32 %v1778_v39, %v627_v45 }
 0x4a5   :  { %v631_v47 = vadd.f32 %v628_v46, %v2136_v5 }
 0x4a7   :  { %v637_v49 = vsel %vm132_vm0, %v631_v47, 0.0 }
 0x4a8   :  { %638 = vadd.xlane.f32.xlu2 %v637_v49 }
 0x4e2   :  { %v636_v4 = vpop.xlane.xlu1 %635 }
 0x4e3   :  { %v647_v56 = vmul.f32 %v2290_v55, %v636_v4 }
 0x4e5   :  { %v649_v57 = vsub.f32 %v630_v43, %v647_v56  ;;  %v734_v43 = vld [vmem:[%s2592_s11] sm:$0xff] }
 0x4e6   :  { %768 = vmatpush.msra.mxu3 %v734_v43 }
 0x4e7   :  { %v651_v58 = vmul.f32 %v649_v57, %v649_v57 }
 0x4e9   :  { %v653_v5 = vsel %vm132_vm0, %v651_v58, 0.0 }
 0x4ea   :  { %654 = vadd.xlane.f32.xlu0 %v653_v5 }
 0x51b   :  { %v639_v59 = vpop.xlane.xlu2 %638 }
 0x51c   :  { %v648_v60 = vmul.f32 %v2290_v55, %v639_v59 }
 0x51e   :  { %v650_v61 = vsub.f32 %v631_v47, %v648_v60 }
 0x520   :  { %v652_v62 = vmul.f32 %v650_v61, %v650_v61 }
 0x522   :  { %v656_v63 = vsel %vm132_vm0, %v652_v62, 0.0 }
 0x523   :  { %657 = vadd.xlane.f32.xlu1 %v656_v63 }
 0x55d   :  { %v655_v6 = vpop.xlane.xlu0 %654 }
 0x55e   :  { %v659_v7 = vmul.f32 %v655_v6, %v2290_v55 }
 0x560   :  { %v661_v8 = vadd.f32 1e-05, %v659_v7  ;;  %v1658_v7 = vld [vmem:[%s2584_s3 + $0x38] sm:$0xff] }
 0x561   :  { %862 = vmatpush.msrb.mxu2 %v1658_v7 }
 0x562   :  { %1828 = vrsqrt.f32 %v661_v8  ;;  %vm669_vm6 = vweird.f32 %v661_v8 }
 0x568   :  { %v1829_v9 = vpop.eup %1828 }
 0x569   :  { %v664_v10 = vmul.f32 %v1829_v9, %v661_v8  ;;  %vm670_vm5 = vweird.f32 %v1829_v9  ;;  %v1657_v8 = vld [vmem:[%s2584_s3 + $0x30] sm:$0xff] }
 0x56a   :  { %vm671_vm7 = vmor %vm669_vm6, %vm670_vm5  ;;  %863 = vmatpush.msrb.mxu2 %v1657_v8 }
 0x56b   :  { %v665_v11 = vmul.f32 %v1829_v9, %v664_v10  ;;  %v1655_v10 = vld [vmem:[%s2584_s3 + $0x20] sm:$0xff] }
 0x56d   :  { %v666_v12 = vmul.f32 0.5, %v665_v11 }
 0x56f   :  { %v667_v14 = vsub.f32 1.5, %v666_v12 }
 0x571   :  { %v668_v15 = vmul.f32 %v1829_v9, %v667_v14 }
 0x573   :  { %v672_v17 = vsel %vm671_vm7, %v1829_v9, %v668_v15  ;;  %v1656_v9 = vld [vmem:[%s2584_s3 + $0x28] sm:$0xff]  ;;  %s2615_s3 = sld [smem:[#allocation14_spill]] }
 0x574   :  { %v683_v18 = vmul.f32 %v672_v17, %v649_v57  ;;  %864 = vmatpush.msrb.mxu2 %v1656_v9 }
 0x576   :  { %v688_v13 = vmul.f32 %v1779_v16, %v683_v18  ;;  %865 = vmatpush.msrb.mxu2 %v1655_v10 }
 0x578   :  { %v693_v20 = vadd.f32 %v1780_v19, %v688_v13 }
 0x57a   :  { %1651 = vmatmul.msk.f32.vlgmr.msra.gmra.mxu1 %vm132_vm0, %v693_v20 }
 0x596   :  { %v658_v24 = vpop.xlane.xlu1 %657 }
 0x597   :  { %v660_v25 = vmul.f32 %v658_v24, %v2290_v55 }
 0x599   :  { %v662_v28 = vadd.f32 1e-05, %v660_v25 }
 0x59b   :  { %1830 = vrsqrt.f32 %v662_v28  ;;  %vm679_vm9 = vweird.f32 %v662_v28 }
 0x5a1   :  { %v1831_v30 = vpop.eup %1830 }
 0x5a2   :  { %v674_v31 = vmul.f32 %v1831_v30, %v662_v28  ;;  %vm680_vm8 = vweird.f32 %v1831_v30 }
 0x5a3   :  { %vm681_vm10 = vmor %vm679_vm9, %vm680_vm8 }
 0x5a4   :  { %v675_v32 = vmul.f32 %v1831_v30, %v674_v31 }
 0x5a6   :  { %v676_v33 = vmul.f32 0.5, %v675_v32 }
 0x5a8   :  { %v677_v34 = vsub.f32 1.5, %v676_v33 }
 0x5aa   :  { %v678_v35 = vmul.f32 %v1831_v30, %v677_v34 }
 0x5ac   :  { %v682_v36 = vsel %vm681_vm10, %v1831_v30, %v678_v35 }
 0x5ad   :  { %v684_v37 = vmul.f32 %v682_v36, %v650_v61 }
 0x5af   :  { %v689_v38 = vmul.f32 %v1779_v16, %v684_v37 }
 0x5b1   :  { %v694_v39 = vadd.f32 %v1780_v19, %v689_v38 }
 0x5b3   :  { %1652 = vmatmul.msk.f32.gmra.mxu1 %vm132_vm0, %v694_v39 }
 0x5f7   :  { %v726_v45 = vpop.f32.mrf.mxu1 }
 0x5f8   :  { %v727_v46 = vadd.f32 %v1781_v44, %v726_v45 }
 0x5fa   :  { %v732_v47 = vmax.f32 %v727_v46, 0.0 }
 0x5fc   :  { %1653 = vmatmul.msk.f32.vlgmr.msra.gmra.mxu3 %vm746_vm11, %v732_v47 }
 0x630   :  { %v729_v49 = vpop.f32.mrf.mxu1 }
 0x631   :  { %v730_v50 = vadd.f32 %v1781_v44, %v729_v49 }
 0x633   :  { %v733_v51 = vmax.f32 %v730_v50, 0.0 }
 0x635   :  { %1654 = vmatmul.msk.f32.gmra.mxu3 %vm746_vm11, %v733_v51 }
 0x67f   :  { %v770_v53 = vpop.f32.mrf.mxu3 }
 0x680   :  { %v771_v48 = vadd.f32 %v1782_v52, %v770_v53 }
 0x682   :  { %v776_v54 = vadd.f32 %v771_v48, %v693_v20  ;;  %v1783_v20 = vld [vmem:[%s2594_s13] ss:$0 sm:$0xff] }
 0x684   :  { %v780_v4 = vsel %vm132_vm0, %v776_v54, 0.0 }
 0x685   :  { %781 = vadd.xlane.f32.xlu2 %v780_v4 }
 0x6b8   :  { %v773_v56 = vpop.f32.mrf.mxu3 }
 0x6b9   :  { %v774_v57 = vadd.f32 %v1782_v52, %v773_v56 }
 0x6bb   :  { %v777_v58 = vadd.f32 %v774_v57, %v694_v39 }
 0x6bd   :  { %v783_v5 = vsel %vm132_vm0, %v777_v58, 0.0 }
 0x6be   :  { %784 = vadd.xlane.f32.xlu1 %v783_v5 }
 0x6f8   :  { %v782_v59 = vpop.xlane.xlu2 %781 }
 0x6f9   :  { %v786_v60 = vmul.f32 %v782_v59, %v2290_v55 }
 0x6fb   :  { %v788_v61 = vsub.f32 %v776_v54, %v786_v60 }
 0x6fd   :  { %v790_v62 = vmul.f32 %v788_v61, %v788_v61 }
 0x6ff   :  { %v792_v63 = vsel %vm132_vm0, %v790_v62, 0.0 }
 0x700   :  { %793 = vadd.xlane.f32.xlu2 %v792_v63 }
 0x731   :  { %v785_v0 = vpop.xlane.xlu1 %784 }
 0x732   :  { %v787_v1 = vmul.f32 %v785_v0, %v2290_v55 }
 0x734   :  { %v789_v2 = vsub.f32 %v777_v58, %v787_v1 }
 0x736   :  { %v791_v3 = vmul.f32 %v789_v2, %v789_v2 }
 0x738   :  { %v795_v6 = vsel %vm132_vm0, %v791_v3, 0.0 }
 0x739   :  { %796 = vadd.xlane.f32.xlu0 %v795_v6 }
 0x773   :  { %v794_v11 = vpop.xlane.xlu2 %793 }
 0x774   :  { %v798_v12 = vmul.f32 %v794_v11, %v2290_v55 }
 0x776   :  { %v800_v14 = vadd.f32 1e-05, %v798_v12 }
 0x778   :  { %1832 = vrsqrt.f32 %v800_v14  ;;  %vm808_vm13 = vweird.f32 %v800_v14 }
 0x77e   :  { %v1833_v15 = vpop.eup %1832 }
 0x77f   :  { %v803_v16 = vmul.f32 %v1833_v15, %v800_v14  ;;  %vm809_vm12 = vweird.f32 %v1833_v15 }
 0x780   :  { %vm810_vm14 = vmor %vm808_vm13, %vm809_vm12 }
 0x781   :  { %v804_v17 = vmul.f32 %v1833_v15, %v803_v16 }
 0x783   :  { %v805_v18 = vmul.f32 0.5, %v804_v17 }
 0x785   :  { %v806_v19 = vsub.f32 1.5, %v805_v18 }
 0x787   :  { %v807_v13 = vmul.f32 %v1833_v15, %v806_v19 }
 0x789   :  { %v811_v21 = vsel %vm810_vm14, %v1833_v15, %v807_v13 }
 0x78a   :  { %v822_v22 = vmul.f32 %v811_v21, %v788_v61 }
 0x78c   :  { %v827_v24 = vmul.f32 %v1783_v20, %v822_v22 }
 0x78e   :  { %v2369_v25 = vadd.f32 %v1784_v23, %v827_v24 }
 0x790   :  { %1660 = vmatmul.msk.f32.vlgmr.msrb.gmra.mxu2 %vm132_vm0, %v2369_v25 }
 0x7ac   :  { %v797_v27 = vpop.xlane.xlu0 %796 }
 0x7ad   :  { %v799_v28 = vmul.f32 %v797_v27, %v2290_v55 }
 0x7af   :  { %v801_v29 = vadd.f32 1e-05, %v799_v28 }
 0x7b1   :  { %1834 = vrsqrt.f32 %v801_v29  ;;  %vm818_vm4 = vweird.f32 %v801_v29 }
 0x7b7   :  { %v1835_v30 = vpop.eup %1834 }
 0x7b8   :  { %v813_v31 = vmul.f32 %v1835_v30, %v801_v29  ;;  %vm819_vm15 = vweird.f32 %v1835_v30 }
 0x7b9   :  { %vm820_vm5 = vmor %vm818_vm4, %vm819_vm15 }
 0x7ba   :  { %v814_v32 = vmul.f32 %v1835_v30, %v813_v31 }
 0x7bc   :  { %v815_v33 = vmul.f32 0.5, %v814_v32 }
 0x7be   :  { %v816_v34 = vsub.f32 1.5, %v815_v33 }
 0x7c0   :  { %v817_v35 = vmul.f32 %v1835_v30, %v816_v34 }
 0x7c2   :  { %v821_v36 = vsel %vm820_vm5, %v1835_v30, %v817_v35 }
 0x7c3   :  { %v823_v37 = vmul.f32 %v821_v36, %v789_v2 }
 0x7c5   :  { %v828_v38 = vmul.f32 %v1783_v20, %v823_v37 }
 0x7c7   :  { %v2374_v39 = vadd.f32 %v1784_v23, %v828_v38 }
 0x7c9   :  { %1661 = vmatmul.msk.f32.gmra.mxu2 %vm132_vm0, %v2374_v39 }
 0x813   :  { %v867_v41 = vpop.f32.mrf.mxu2 }
 0x814   :  { %v868_v43 = vadd.f32 %v1785_v40, %v867_v41 }
 0x816   :  { %971 = vrot.lane.b32.xlu0 %v868_v43, %s1988_s19  ;;  %975 = vrot.lane.b32.xlu2 %v868_v43, %s1989_s1 }
 0x81e   :  { %875 = vrot.lane.b32.xlu0 %v868_v43, %s1990_s15 }
 0x826   :  { %1175 = vrot.lane.b32.xlu0 %v868_v43, %s1992_s16 }
 0x82e   :  { %1075 = vrot.lane.b32.xlu0 %v868_v43, %s1993_s22 }
 0x84c   :  { %v870_v44 = vpop.f32.mrf.mxu2 }
 0x84d   :  { %v871_v45 = vadd.f32 %v1785_v40, %v870_v44 }
 0x84f   :  { %977 = vrot.lane.b32.xlu1 %v871_v45, %s1989_s1  ;;  %1073 = vrot.lane.b32.xlu0 %v871_v45, %s1994_s2  ;;  %v2395_v46 = vpack.i.bf16 %v868_v43, %v871_v45  ;;  %s2614_s1 = smov 24  }
 0x850   :  { %973 = vrot.lane.b32.xlu2 %v871_v45, %s1988_s19  ;;  %s2613_s19 = smov 8  }
 0x857   :  { %877 = vrot.lane.b32.xlu1 %v871_v45, %s1990_s15 }
 0x858   :  { %1171 = vrot.lane.b32.xlu2 %v868_v43, %s1991_s20 }
 0x85f   :  { %1177 = vrot.lane.b32.xlu1 %v871_v45, %s1992_s16 }
 0x860   :  { %1173 = vrot.lane.b32.xlu2 %v871_v45, %s1991_s20 }
 0x867   :  { %1077 = vrot.lane.b32.xlu1 %v871_v45, %s1993_s22 }
 0x86f   :  { %1071 = vrot.lane.b32.xlu1 %v868_v43, %s1994_s2 }
 0x870   :  { %v976_v50 = vpop.permute.xlu2 %975 }
 0x877   :  { %1758 = vrot.lane.b32.xlu1 %v2395_v46, %s1997_s28 }
 0x888   :  { %v972_v47 = vpop.permute.xlu0 %971 }
 0x890   :  { %v876_v51 = vpop.permute.xlu0 %875 }
 0x898   :  { %v1176_v54 = vpop.permute.xlu0 %1175 }
 0x8a0   :  { %v1076_v57 = vpop.permute.xlu0 %1075 }
 0x8aa   :  { %v974_v53 = vpop.permute.xlu2 %973 }
 0x8b2   :  { %v1172_v4 = vpop.permute.xlu2 %1171 }
 0x8ba   :  { %v1174_v58 = vpop.permute.xlu2 %1173 }
 0x8c1   :  { %v978_v49 = vpop.permute.xlu1 %977  ;;  %v1074_v59 = vpop.permute.xlu0 %1073 }
 0x8c2   :  { %1668 = vmatpush.xpose.msk.msrb.mxu3 %vm168_vm1, %v978_v49 }
 0x8c6   :  { %1669 = vmatpush.xpose.msk.msrb.mxu3 %vm168_vm1, %v976_v50 }
 0x8c9   :  { %v878_v52 = vpop.permute.xlu1 %877  ;;  %1670 = vmatmul.msk.f32.vlgmr.msrb.gmra.mxu3 %vm168_vm1, %v972_v47 }
 0x8ca   :  { %1662 = vmatpush.xpose.msk.msrb.mxu0 %vm168_vm1, %v878_v52 }
 0x8ce   :  { %1663 = vmatpush.xpose.msk.msrb.mxu0 %vm168_vm1, %v876_v51 }
 0x8d1   :  { %v1178_v48 = vpop.permute.xlu1 %1177  ;;  %1664 = vmatmul.msk.f32.vlgmr.msrb.gmra.mxu0 %vm168_vm1, %v868_v43  ;;  %1671 = vmatmul.msk.f32.gmra.mxu3 %vm168_vm1, %v974_v53 }
 0x8d2   :  { %1680 = vmatpush.xpose.msk.msra.mxu3 %vm168_vm1, %v1178_v48 }
 0x8d6   :  { %1681 = vmatpush.xpose.msk.msra.mxu3 %vm168_vm1, %v1176_v54 }
 0x8d9   :  { %v1078_v56 = vpop.permute.xlu1 %1077  ;;  %1665 = vmatmul.msk.f32.gmra.mxu0 %vm168_vm1, %v871_v45  ;;  %1682 = vmatmul.msk.f32.vlgmr.msra.gmra.mxu3 %vm168_vm1, %v1172_v4 }
 0x8da   :  { %1674 = vmatpush.xpose.msk.msra.mxu0 %vm168_vm1, %v1078_v56 }
 0x8de   :  { %1675 = vmatpush.xpose.msk.msra.mxu0 %vm168_vm1, %v1076_v57 }
 0x8e1   :  { %v1072_v5 = vpop.permute.xlu1 %1071  ;;  %1683 = vmatmul.msk.f32.gmra.mxu3 %vm168_vm1, %v1174_v58 }
 0x8e2   :  { %1676 = vmatmul.msk.f32.vlgmr.msra.gmra.mxu0 %vm168_vm1, %v1072_v5 }
 0x8e9   :  { %v1759_v60 = vpop.permute.xlu1 %1758 }
 0x8ea   :  { %v1760_v61 = vunpack.i.l.bf16 %v1759_v60  ;;  %1677 = vmatmul.msk.f32.gmra.mxu0 %vm168_vm1, %v1074_v59  ;;  %v1761_v62 = vunpack.i.h.bf16 %v1759_v60 }
 0x8ec   :  { %1062 = vmatpush.msra.mxu2 %v1760_v61 }
 0x8ee   :  { %1063 = vmatpush.msra.mxu2 %v1761_v62 }
 0x94c   :  { %v1004_v63 = vpop.f32.mrf.mxu3 }
 0x94d   :  { %v1010_v0 = vmul.f32 0.35355338, %v1004_v63 }
 0x94e   :  { %v904_v1 = vpop.f32.mrf.mxu0 }
 0x94f   :  { %v910_v2 = vmul.f32 0.35355338, %v904_v1  ;;  %v1012_v3 = vadd.f32 %v1010_v0, %v2196_v26 }
 0x951   :  { %v1014_v6 = vsel %vm204_vm2, %v1012_v3, -inf  ;;  %v912_v7 = vadd.f32 %v910_v2, %v2196_v26 }
 0x952   :  { %1015 = vmax.xlane.f32.xlu2 %v1014_v6 }
 0x953   :  { %v914_v8 = vsel %vm204_vm2, %v912_v7, -inf }
 0x954   :  { %915 = vmax.xlane.f32.xlu1 %v914_v8  ;;  %v1007_v9 = vpop.f32.mrf.mxu3 }
 0x955   :  { %v1011_v10 = vmul.f32 0.35355338, %v1007_v9 }
 0x956   :  { %v907_v11 = vpop.f32.mrf.mxu0 }
 0x957   :  { %v911_v12 = vmul.f32 0.35355338, %v907_v11  ;;  %v1013_v14 = vadd.f32 %v1011_v10, %v2207_v42 }
 0x959   :  { %v1017_v15 = vsel %vm204_vm2, %v1013_v14, -inf  ;;  %v913_v16 = vadd.f32 %v911_v12, %v2207_v42 }
 0x95a   :  { %1018 = vmax.xlane.f32.xlu0 %v1017_v15 }
 0x95b   :  { %v917_v17 = vsel %vm204_vm2, %v913_v16, -inf }
 0x95c   :  { %918 = vmax.xlane.f32.xlu2 %v917_v17  ;;  %v1204_v18 = vpop.f32.mrf.mxu3 }
 0x95d   :  { %v1210_v19 = vmul.f32 0.35355338, %v1204_v18 }
 0x95f   :  { %v1104_v13 = vpop.f32.mrf.mxu0  ;;  %v1212_v20 = vadd.f32 %v1210_v19, %v2196_v26 }
 0x960   :  { %v1110_v21 = vmul.f32 0.35355338, %v1104_v13 }
 0x961   :  { %v1214_v22 = vsel %vm204_vm2, %v1212_v20, -inf }
 0x962   :  { %1215 = vmax.xlane.f32.xlu1 %v1214_v22  ;;  %v1112_v23 = vadd.f32 %v1110_v21, %v2196_v26 }
 0x964   :  { %v1207_v24 = vpop.f32.mrf.mxu3  ;;  %v1114_v27 = vsel %vm204_vm2, %v1112_v23, -inf }
 0x965   :  { %v1211_v28 = vmul.f32 0.35355338, %v1207_v24  ;;  %1115 = vmax.xlane.f32.xlu0 %v1114_v27 }
 0x967   :  { %v1107_v29 = vpop.f32.mrf.mxu0  ;;  %v2428_v30 = vadd.f32 %v1211_v28, %v2207_v42 }
 0x968   :  { %v1111_v31 = vmul.f32 0.35355338, %v1107_v29 }
 0x969   :  { %v1217_v32 = vsel %vm204_vm2, %v2428_v30, -inf }
 0x96a   :  { %1218 = vmax.xlane.f32.xlu2 %v1217_v32  ;;  %v1113_v33 = vadd.f32 %v1111_v31, %v2207_v42 }
 0x96c   :  { %v1117_v34 = vsel %vm204_vm2, %v1113_v33, -inf }
 0x96d   :  { %1118 = vmax.xlane.f32.xlu1 %v1117_v34 }
 0x986   :  { %1768 = vrot.lane.b32.xlu1 %v2395_v46, %s1996_s10 }
 0x9c5   :  { %v1016_v26 = vpop.xlane.xlu2 %1015 }
 0x9c6   :  { %v1020_v35 = vsub.f32 %v1012_v3, %v1016_v26 }
 0x9c7   :  { %v916_v36 = vpop.xlane.xlu1 %915 }
 0x9c8   :  { %v1022_v37 = vmul.f32 1.442695, %v1020_v35  ;;  %v920_v38 = vsub.f32 %v912_v7, %v916_v36 }
 0x9ca   :  { %1836 = vpow2.f32 %v1022_v37  ;;  %v922_v40 = vmul.f32 1.442695, %v920_v38 }
 0x9cc   :  { %1838 = vpow2.f32 %v922_v40 }
 0x9cd   :  { %v1019_v41 = vpop.xlane.xlu0 %1018 }
 0x9ce   :  { %v1021_v49 = vsub.f32 %v1013_v14, %v1019_v41 }
 0x9cf   :  { %v919_v43 = vpop.xlane.xlu2 %918 }
 0x9d0   :  { %v1837_v44 = vpop.eup %1836  ;;  %v921_v45 = vsub.f32 %v913_v16, %v919_v43  ;;  %v1024_v52 = vmul.f32 1.442695, %v1021_v49 }
 0x9d1   :  { %v1026_v42 = vsel %vm204_vm2, %v1837_v44, 0.0 }
 0x9d2   :  { %v2437_v47 = vpop.eup %1838  ;;  %v924_v50 = vmul.f32 1.442695, %v921_v45  ;;  %1027 = vadd.xlane.f32.xlu0 %v1026_v42 }
 0x9d3   :  { %v926_v51 = vsel %vm204_vm2, %v2437_v47, 0.0 }
 0x9d4   :  { %1840 = vpow2.f32 %v924_v50  ;;  %927 = vadd.xlane.f32.xlu2 %v926_v51 }
 0x9d5   :  { %v1216_v53 = vpop.xlane.xlu1 %1215  ;;  %1842 = vpow2.f32 %v1024_v52 }
 0x9d6   :  { %v1220_v60 = vsub.f32 %v1212_v20, %v1216_v53 }
 0x9d8   :  { %v1116_v48 = vpop.xlane.xlu0 %1115  ;;  %v1222_v63 = vmul.f32 1.442695, %v1220_v60 }
 0x9d9   :  { %v1120_v4 = vsub.f32 %v1112_v23, %v1116_v48 }
 0x9da   :  { %v1841_v54 = vpop.eup %1840 }
 0x9db   :  { %v929_v56 = vsel %vm204_vm2, %v1841_v54, 0.0  ;;  %v1122_v57 = vmul.f32 1.442695, %v1120_v4  ;;  %v1843_v58 = vpop.eup %1842 }
 0x9dc   :  { %930 = vadd.xlane.f32.xlu0 %v929_v56  ;;  %v1029_v62 = vsel %vm204_vm2, %v1843_v58, 0.0  ;;  %v1689_v56 = vld [vmem:[%s2586_s5 + $0x38] sm:$0xff] }
 0x9dd   :  { %1844 = vpow2.f32 %v1122_v57  ;;  %v1219_v11 = vpop.xlane.xlu2 %1218  ;;  %v1688_v57 = vld [vmem:[%s2586_s5 + $0x30] sm:$0xff]  ;;  %1329 = vmatpush.msrb.mxu0 %v1689_v56 }
 0x9de   :  { %v1221_v12 = vsub.f32 %v2428_v30, %v1219_v11 }
 0x9df   :  { %1330 = vmatpush.msrb.mxu0 %v1688_v57 }
 0x9e0   :  { %v1119_v5 = vpop.xlane.xlu1 %1118  ;;  %v1224_v14 = vmul.f32 1.442695, %v1221_v12 }
 0x9e1   :  { %v1121_v59 = vsub.f32 %v1113_v33, %v1119_v5  ;;  %v1686_v5 = vld [vmem:[%s2586_s5 + $0x20] sm:$0xff] }
 0x9e3   :  { %v1124_v61 = vmul.f32 1.442695, %v1121_v59  ;;  %v2443_v0 = vpop.eup %1844 }
 0x9e4   :  { %1030 = vadd.xlane.f32.xlu0 %v1029_v62  ;;  %v1126_v2 = vsel %vm204_vm2, %v2443_v0, 0.0 }
 0x9e5   :  { %1846 = vpow2.f32 %v1124_v61 }
 0x9e6   :  { %1848 = vpow2.f32 %v1222_v63 }
 0x9e7   :  { %1850 = vpow2.f32 %v1224_v14 }
 0x9eb   :  { %v2445_v1 = vpop.eup %1846 }
 0x9ec   :  { %1763 = vrot.lane.b32.xlu2 %v2395_v46, %s1995_s27  ;;  %1127 = vadd.xlane.f32.xlu0 %v1126_v2  ;;  %v1129_v3 = vsel %vm204_vm2, %v2445_v1, 0.0  ;;  %v1849_v6 = vpop.eup %1848 }
 0x9ed   :  { %1130 = vadd.xlane.f32.xlu1 %v1129_v3  ;;  %v1226_v7 = vsel %vm204_vm2, %v1849_v6, 0.0  ;;  %v1851_v15 = vpop.eup %1850 }
 0x9ee   :  { %v1229_v16 = vsel %vm204_vm2, %v1851_v15, 0.0 }
 0x9f4   :  { %1227 = vadd.xlane.f32.xlu0 %v1226_v7 }
 0x9f8   :  { %v1769_v8 = vpop.permute.xlu1 %1768 }
 0x9f9   :  { %v1770_v9 = vunpack.i.l.bf16 %v1769_v8  ;;  %v1771_v10 = vunpack.i.h.bf16 %v1769_v8 }
 0x9fb   :  { %1262 = vmatpush.msrb.mxu2 %v1770_v9  ;;  %v1786_v9 = vld [vmem:[%s2587_s6 + $0x1] ss:$0 sm:$0xff] }
 0x9fd   :  { %1263 = vmatpush.msrb.mxu2 %v1771_v10 }
 0xa08   :  { %1773 = vrot.lane.b32.xlu0 %v2395_v46, %s2612_s4  ;;  %s2001_s4 = smov 32  }
 0xa15   :  { %1230 = vadd.xlane.f32.xlu2 %v1229_v16 }
 0xa45   :  { %v1028_v17 = vpop.xlane.xlu0 %1027 }
 0xa46   :  { %1852 = vrcp.f32 %v1028_v17 }
 0xa47   :  { %v928_v18 = vpop.xlane.xlu2 %927 }
 0xa48   :  { %1854 = vrcp.f32 %v928_v18 }
 0xa4c   :  { %v1853_v19 = vpop.eup %1852 }
 0xa4d   :  { %v1034_v13 = vmul.f32 %v1853_v19, %v1837_v44 }
 0xa4e   :  { %v1855_v22 = vpop.eup %1854 }
 0xa4f   :  { %1672 = vmatmul.msk.f32.vlgmr.msra.gmra.mxu2 %vm204_vm2, %v1034_v13  ;;  %v931_v20 = vpop.xlane.xlu0 %930  ;;  %v1764_v21 = vpop.permute.xlu2 %1763  ;;  %v934_v46 = vmul.f32 %v1855_v22, %v2437_v47 }
 0xa50   :  { %v1765_v23 = vunpack.i.l.bf16 %v1764_v21  ;;  %1856 = vrcp.f32 %v931_v20  ;;  %v1766_v24 = vunpack.i.h.bf16 %v1764_v21 }
 0xa52   :  { %962 = vmatpush.msrb.mxu1 %v1765_v23 }
 0xa54   :  { %963 = vmatpush.msrb.mxu1 %v1766_v24 }
 0xa55   :  { %1666 = vmatmul.msk.f32.vlgmr.msrb.gmra.mxu1 %vm204_vm2, %v934_v46 }
 0xa56   :  { %v1857_v28 = vpop.eup %1856 }
 0xa57   :  { %v1031_v27 = vpop.xlane.xlu0 %1030  ;;  %v935_v29 = vmul.f32 %v1857_v28, %v1841_v54  ;;  %v1697_v28 = vld [vmem:[%s2590_s9 + $0x30] sm:$0xff] }
 0xa58   :  { %1858 = vrcp.f32 %v1031_v27 }
 0xa5d   :  { %1667 = vmatmul.msk.f32.gmra.mxu1 %vm204_vm2, %v935_v29  ;;  %v1696_v29 = vld [vmem:[%s2590_s9 + $0x28] sm:$0xff] }
 0xa5e   :  { %v1859_v30 = vpop.eup %1858 }
 0xa5f   :  { %v1128_v31 = vpop.xlane.xlu0 %1127  ;;  %v1035_v32 = vmul.f32 %v1859_v30, %v1843_v58  ;;  %v1687_v58 = vld [vmem:[%s2586_s5 + $0x28] sm:$0xff]  ;;  %v1695_v30 = vld [vmem:[%s2590_s9 + $0x20] sm:$0xff] }
 0xa60   :  { %v1131_v35 = vpop.xlane.xlu1 %1130  ;;  %1331 = vmatpush.msrb.mxu0 %v1687_v58 }
 0xa61   :  { %1673 = vmatmul.msk.f32.gmra.mxu2 %vm204_vm2, %v1035_v32 }
 0xa62   :  { %1332 = vmatpush.msrb.mxu0 %v1686_v5 }
 0xa67   :  { %v1228_v33 = vpop.xlane.xlu0 %1227 }
 0xa68   :  { %1860 = vrcp.f32 %v1228_v33 }
 0xa69   :  { %1862 = vrcp.f32 %v1128_v31 }
 0xa6a   :  { %1864 = vrcp.f32 %v1131_v35 }
 0xa6e   :  { %v1861_v34 = vpop.eup %1860 }
 0xa6f   :  { %v1234_v26 = vmul.f32 %v1861_v34, %v1849_v6  ;;  %v1863_v37 = vpop.eup %1862 }
 0xa70   :  { %v1134_v41 = vmul.f32 %v1863_v37, %v2443_v0  ;;  %v1865_v43 = vpop.eup %1864 }
 0xa71   :  { %1684 = vmatmul.msk.f32.vlgmr.msrb.gmra.mxu2 %vm204_vm2, %v1234_v26  ;;  %v1135_v44 = vmul.f32 %v1865_v43, %v2445_v1  ;;  %v1787_v43 = vld [vmem:[%s2588_s7 + $0x1] ss:$0 sm:$0xff] }
 0xa7a   :  { %v1774_v36 = vpop.permute.xlu0 %1773 }
 0xa7b   :  { %v1775_v38 = vunpack.i.l.bf16 %v1774_v36  ;;  %v1776_v40 = vunpack.i.h.bf16 %v1774_v36 }
 0xa7d   :  { %1162 = vmatpush.msra.mxu1 %v1775_v38 }
 0xa7f   :  { %1163 = vmatpush.msra.mxu1 %v1776_v40  ;;  %v1708_v40 = vld [vmem:[%s2592_s11 + $0x78] sm:$0xff] }
 0xa80   :  { %1678 = vmatmul.msk.f32.vlgmr.msra.gmra.mxu1 %vm204_vm2, %v1134_v41  ;;  %v1707_v41 = vld [vmem:[%s2592_s11 + $0x70] sm:$0xff]  ;;  %1469 = vmatpush.msrb.mxu3 %v1708_v40 }
 0xa81   :  { %v1569_v40 = vld [vmem:[#allocation6 + $0x8] sm:$0xff] }
 0xa82   :  { %1470 = vmatpush.msrb.mxu3 %v1707_v41 }
 0xa88   :  { %v1231_v45 = vpop.xlane.xlu2 %1230  ;;  %1679 = vmatmul.msk.f32.gmra.mxu1 %vm204_vm2, %v1135_v44 }
 0xa89   :  { %1866 = vrcp.f32 %v1231_v45  ;;  %v1706_v45 = vld [vmem:[%s2592_s11 + $0x68] sm:$0xff] }
 0xa8a   :  { %1471 = vmatpush.msrb.mxu3 %v1706_v45 }
 0xa8f   :  { %v1867_v42 = vpop.eup %1866 }
 0xa90   :  { %v1235_v47 = vmul.f32 %v1867_v42, %v1851_v15 }
 0xa92   :  { %1685 = vmatmul.msk.f32.gmra.mxu2 %vm204_vm2, %v1235_v47 }
 0xad2   :  { %v1065_v49 = vpop.f32.mrf.mxu2  ;;  %v965_v50 = vpop.f32.mrf.mxu1 }
 0xad3   :  { %1273 = vrot.lane.b32.xlu0 %v1065_v49, %s2613_s19  ;;  %v1788_v49 = vld [vmem:[%s2589_s8 + $0x1] ss:$0 sm:$0xff] }
 0xada   :  { %v968_v53 = vpop.f32.mrf.mxu1 }
 0xae4   :  { %v1068_v51 = vpop.f32.mrf.mxu2 }
 0xaf4   :  { %v1265_v52 = vpop.f32.mrf.mxu2 }
 0xaf5   :  { %1289 = vrot.lane.b32.xlu2 %v1265_v52, %s2614_s1 }
 0xafd   :  { %v1165_v48 = vpop.f32.mrf.mxu1 }
 0xafe   :  { %1281 = vrot.lane.b32.xlu0 %v1165_v48, %s1981_s21  ;;  %v1704_v48 = vld [vmem:[%s2592_s11 + $0x58] sm:$0xff] }
 0xb05   :  { %v1168_v54 = vpop.f32.mrf.mxu1 }
 0xb06   :  { %1275 = vrot.lane.b32.xlu0 %v1068_v51, %s2613_s19  ;;  %1283 = vrot.lane.b32.xlu1 %v1168_v54, %s1981_s21  ;;  %v1705_v51 = vld [vmem:[%s2592_s11 + $0x60] sm:$0xff] }
 0xb07   :  { %1472 = vmatpush.msrb.mxu3 %v1705_v51 }
 0xb09   :  { %1473 = vmatpush.msrb.mxu3 %v1704_v48 }
 0xb15   :  { %v1268_v4 = vpop.f32.mrf.mxu2 }
 0xb16   :  { %1291 = vrot.lane.b32.xlu0 %v1268_v4, %s2614_s1 }
 0xb45   :  { %v1274_v59 = vpop.permute.xlu0 %1273 }
 0xb46   :  { %v1295_v60 = vsel %vm168_vm1, %v965_v50, %v1274_v59 }
 0xb4f   :  { %v1290_v62 = vpop.permute.xlu2 %1289 }
 0xb70   :  { %v1282_v61 = vpop.permute.xlu0 %1281 }
 0xb71   :  { %v1297_v63 = vsel %vm204_vm2, %v1295_v60, %v1282_v61 }
 0xb72   :  { %v1299_v0 = vsel %vm590_vm3, %v1297_v63, %v1290_v62 }
 0xb73   :  { %1691 = vmatmul.msk.f32.vlgmr.msrb.gmra.mxu0 %vm132_vm0, %v1299_v0  ;;  %v1703_v0 = vld [vmem:[%s2592_s11 + $0x50] sm:$0xff] }
 0xb74   :  { %1474 = vmatpush.msrb.mxu3 %v1703_v0 }
 0xb78   :  { %v1276_v1 = vpop.permute.xlu0 %1275  ;;  %v1284_v3 = vpop.permute.xlu1 %1283 }
 0xb79   :  { %v1296_v2 = vsel %vm168_vm1, %v968_v53, %v1276_v1  ;;  %v1702_v1 = vld [vmem:[%s2592_s11 + $0x48] sm:$0xff] }
 0xb7a   :  { %v1298_v6 = vsel %vm204_vm2, %v1296_v2, %v1284_v3  ;;  %1475 = vmatpush.msrb.mxu3 %v1702_v1  ;;  %v1701_v2 = vld [vmem:[%s2592_s11 + $0x40] sm:$0xff] }
 0xb7b   :  { %v1789_v3 = vld [vmem:[#allocation2 + $0x1] ss:$0 sm:$0xff] }
 0xb7c   :  { %1476 = vmatpush.msrb.mxu3 %v1701_v2 }
 0xb88   :  { %v1292_v7 = vpop.permute.xlu0 %1291 }
 0xb89   :  { %v1300_v8 = vsel %vm590_vm3, %v1298_v6, %v1292_v7 }
 0xb8a   :  { %1692 = vmatmul.msk.f32.gmra.mxu0 %vm132_vm0, %v1300_v8 }
 0xbf0   :  { %v1334_v10 = vpop.f32.mrf.mxu0 }
 0xbf1   :  { %v1335_v11 = vadd.f32 %v1786_v9, %v1334_v10 }
 0xbf3   :  { %v1340_v12 = vadd.f32 %v1335_v11, %v2369_v25 }
 0xbf5   :  { %v1346_v14 = vsel %vm132_vm0, %v1340_v12, 0.0 }
 0xbf6   :  { %1347 = vadd.xlane.f32.xlu0 %v1346_v14 }
 0xc07   :  { %v1337_v15 = vpop.f32.mrf.mxu0 }
 0xc08   :  { %v1338_v16 = vadd.f32 %v1786_v9, %v1337_v15 }
 0xc0a   :  { %v1341_v17 = vadd.f32 %v1338_v16, %v2374_v39  ;;  %v1698_v39 = vld [vmem:[%s2590_s9 + $0x38] sm:$0xff] }
 0xc0b   :  { %1428 = vmatpush.msrb.mxu1 %v1698_v39 }
 0xc0c   :  { %v1349_v18 = vsel %vm132_vm0, %v1341_v17, 0.0 }
 0xc0d   :  { %1350 = vadd.xlane.f32.xlu2 %v1349_v18  ;;  %1429 = vmatpush.msrb.mxu1 %v1697_v28 }
 0xc0f   :  { %1430 = vmatpush.msrb.mxu1 %v1696_v29 }
 0xc11   :  { %1431 = vmatpush.msrb.mxu1 %v1695_v30 }
 0xc69   :  { %v1348_v19 = vpop.xlane.xlu0 %1347 }
 0xc6a   :  { %v1352_v13 = vmul.f32 %v1348_v19, %v2290_v55 }
 0xc6c   :  { %v1354_v20 = vsub.f32 %v1340_v12, %v1352_v13  ;;  %v1790_v12 = vld [vmem:[%s2593_s12 + $0x1] ss:$0 sm:$0xff] }
 0xc6e   :  { %v1356_v21 = vmul.f32 %v1354_v20, %v1354_v20 }
 0xc70   :  { %v1358_v22 = vsel %vm132_vm0, %v1356_v21, 0.0 }
 0xc71   :  { %1359 = vadd.xlane.f32.xlu1 %v1358_v22 }
 0xc80   :  { %v1351_v23 = vpop.xlane.xlu2 %1350 }
 0xc81   :  { %v1353_v25 = vmul.f32 %v1351_v23, %v2290_v55 }
 0xc83   :  { %v1355_v24 = vsub.f32 %v1341_v17, %v1353_v25 }
 0xc85   :  { %v1357_v46 = vmul.f32 %v1355_v24, %v1355_v24 }
 0xc87   :  { %v1361_v27 = vsel %vm132_vm0, %v1357_v46, 0.0 }
 0xc88   :  { %1362 = vadd.xlane.f32.xlu0 %v1361_v27 }
 0xce4   :  { %v1360_v31 = vpop.xlane.xlu1 %1359 }
 0xce5   :  { %v1364_v32 = vmul.f32 %v1360_v31, %v2290_v55 }
 0xce7   :  { %v1366_v33 = vadd.f32 1e-05, %v1364_v32 }
 0xce9   :  { %1868 = vrsqrt.f32 %v1366_v33  ;;  %vm1374_vm3 = vweird.f32 %v1366_v33 }
 0xcef   :  { %v1869_v34 = vpop.eup %1868 }
 0xcf0   :  { %v1369_v26 = vmul.f32 %v1869_v34, %v1366_v33  ;;  %vm1375_vm1 = vweird.f32 %v1869_v34 }
 0xcf1   :  { %vm1376_vm6 = vmor %vm1374_vm3, %vm1375_vm1 }
 0xcf2   :  { %v1370_v35 = vmul.f32 %v1869_v34, %v1369_v26 }
 0xcf4   :  { %v1371_v36 = vmul.f32 0.5, %v1370_v35  ;;  %v1571_v35 = vld [vmem:[#allocation6 + $0x18] sm:$0xff] }
 0xcf5   :  { %1591 = vmatpush.msra.mxu0 %v1571_v35 }
 0xcf6   :  { %v1372_v37 = vsub.f32 1.5, %v1371_v36  ;;  %v1570_v36 = vld [vmem:[#allocation6 + $0x10] sm:$0xff] }
 0xcf7   :  { %1592 = vmatpush.msra.mxu0 %v1570_v36 }
 0xcf8   :  { %v1373_v38 = vmul.f32 %v1869_v34, %v1372_v37 }
 0xcf9   :  { %1593 = vmatpush.msra.mxu0 %v1569_v40 }
 0xcfa   :  { %v1377_v44 = vsel %vm1376_vm6, %v1869_v34, %v1373_v38 }
 0xcfb   :  { %v1388_v42 = vmul.f32 %v1377_v44, %v1354_v20  ;;  %v1363_v47 = vpop.xlane.xlu0 %1362 }
 0xcfc   :  { %v1365_v50 = vmul.f32 %v1363_v47, %v2290_v55 }
 0xcfd   :  { %v1393_v52 = vmul.f32 %v1787_v43, %v1388_v42 }
 0xcfe   :  { %v1367_v53 = vadd.f32 1e-05, %v1365_v50 }
 0xcff   :  { %v1398_v54 = vadd.f32 %v1788_v49, %v1393_v52 }
 0xd00   :  { %1870 = vrsqrt.f32 %v1367_v53  ;;  %vm1384_vm8 = vweird.f32 %v1367_v53 }
 0xd01   :  { %1699 = vmatmul.msk.f32.vlgmr.msrb.gmra.mxu1 %vm132_vm0, %v1398_v54 }
 0xd06   :  { %v1871_v4 = vpop.eup %1870 }
 0xd07   :  { %v1379_v56 = vmul.f32 %v1871_v4, %v1367_v53  ;;  %vm1385_vm7 = vweird.f32 %v1871_v4  ;;  %v1791_v53 = vld [vmem:[%s2594_s13 + $0x1] ss:$0 sm:$0xff] }
 0xd08   :  { %vm1386_vm9 = vmor %vm1384_vm8, %vm1385_vm7 }
 0xd09   :  { %v1380_v57 = vmul.f32 %v1871_v4, %v1379_v56 }
 0xd0b   :  { %v1381_v58 = vmul.f32 0.5, %v1380_v57  ;;  %v1792_v57 = vld [vmem:[#allocation4 + $0x1] ss:$0 sm:$0xff] }
 0xd0d   :  { %v1382_v5 = vsub.f32 1.5, %v1381_v58 }
 0xd0f   :  { %v1383_v59 = vmul.f32 %v1871_v4, %v1382_v5 }
 0xd11   :  { %v1387_v60 = vsel %vm1386_vm9, %v1871_v4, %v1383_v59 }
 0xd12   :  { %v1389_v61 = vmul.f32 %v1387_v60, %v1355_v24  ;;  %v1544_v60 = vld [vmem:[%s2615_s3] sm:$0x3] }
 0xd14   :  { %v1394_v62 = vmul.f32 %v1787_v43, %v1389_v61  ;;  %v1568_v61 = vld [vmem:[#allocation6] sm:$0xff] }
 0xd15   :  { %1594 = vmatpush.msra.mxu0 %v1568_v61 }
 0xd16   :  { %v1399_v63 = vadd.f32 %v1788_v49, %v1394_v62 }
 0xd18   :  { %1700 = vmatmul.msk.f32.gmra.mxu1 %vm132_vm0, %v1399_v63 }
 0xd7e   :  { %v1433_v6 = vpop.f32.mrf.mxu1 }
 0xd7f   :  { %v1434_v7 = vadd.f32 %v1789_v3, %v1433_v6 }
 0xd81   :  { %v1439_v8 = vmax.f32 %v1434_v7, 0.0  ;;  %v1599_v7 = vld [vmem:[%s2598_s17] sm:$0x3] }
 0xd83   :  { %1710 = vmatmul.msk.f32.vlgmr.msrb.gmra.mxu3 %vm746_vm11, %v1439_v8 }
 0xd95   :  { %v1436_v9 = vpop.f32.mrf.mxu1 }
 0xd96   :  { %v1437_v10 = vadd.f32 %v1789_v3, %v1436_v9 }
 0xd98   :  { %v1440_v11 = vmax.f32 %v1437_v10, 0.0 }
 0xd9a   :  { %1711 = vmatmul.msk.f32.gmra.mxu3 %vm746_vm11, %v1440_v11 }
 0xe06   :  { %v1478_v14 = vpop.f32.mrf.mxu3 }
 0xe07   :  { %v1479_v15 = vadd.f32 %v1790_v12, %v1478_v14 }
 0xe09   :  { %v1484_v16 = vadd.f32 %v1479_v15, %v1398_v54 }
 0xe0b   :  { %v1490_v17 = vsel %vm132_vm0, %v1484_v16, 0.0 }
 0xe0c   :  { %1491 = vadd.xlane.f32.xlu0 %v1490_v17 }
 0xe1d   :  { %v1481_v18 = vpop.f32.mrf.mxu3 }
 0xe1e   :  { %v1482_v19 = vadd.f32 %v1790_v12, %v1481_v18 }
 0xe20   :  { %v1485_v13 = vadd.f32 %v1482_v19, %v1399_v63  ;;  %v1793_v63 = vld [vmem:[#allocation7] ss:$0 sm:$0xff] }
 0xe22   :  { %v1493_v20 = vsel %vm132_vm0, %v1485_v13, 0.0 }
 0xe23   :  { %1494 = vadd.xlane.f32.xlu2 %v1493_v20 }
 0xe7f   :  { %v1492_v21 = vpop.xlane.xlu0 %1491 }
 0xe80   :  { %v1496_v22 = vmul.f32 %v1492_v21, %v2290_v55 }
 0xe82   :  { %v1498_v23 = vsub.f32 %v1484_v16, %v1496_v22 }
 0xe84   :  { %v1500_v25 = vmul.f32 %v1498_v23, %v1498_v23 }
 0xe86   :  { %v1502_v24 = vsel %vm132_vm0, %v1500_v25, 0.0 }
 0xe87   :  { %1503 = vadd.xlane.f32.xlu1 %v1502_v24 }
 0xe96   :  { %v1495_v46 = vpop.xlane.xlu2 %1494 }
 0xe97   :  { %v1497_v27 = vmul.f32 %v1495_v46, %v2290_v55 }
 0xe99   :  { %v1499_v39 = vsub.f32 %v1485_v13, %v1497_v27 }
 0xe9b   :  { %v1501_v28 = vmul.f32 %v1499_v39, %v1499_v39 }
 0xe9d   :  { %v1505_v29 = vsel %vm132_vm0, %v1501_v28, 0.0 }
 0xe9e   :  { %1506 = vadd.xlane.f32.xlu2 %v1505_v29 }
 0xefa   :  { %v1504_v30 = vpop.xlane.xlu1 %1503 }
 0xefb   :  { %v1508_v31 = vmul.f32 %v1504_v30, %v2290_v55 }
 0xefd   :  { %v1510_v32 = vadd.f32 1e-05, %v1508_v31 }
 0xeff   :  { %1872 = vrsqrt.f32 %v1510_v32  ;;  %vm1518_vm11 = vweird.f32 %v1510_v32 }
 0xf05   :  { %v1873_v33 = vpop.eup %1872 }
 0xf06   :  { %v1513_v34 = vmul.f32 %v1873_v33, %v1510_v32  ;;  %vm1519_vm10 = vweird.f32 %v1873_v33 }
 0xf07   :  { %vm1520_vm12 = vmor %vm1518_vm11, %vm1519_vm10 }
 0xf08   :  { %v1514_v38 = vmul.f32 %v1873_v33, %v1513_v34 }
 0xf0a   :  { %v1515_v43 = vmul.f32 0.5, %v1514_v38 }
 0xf0c   :  { %v1516_v44 = vsub.f32 1.5, %v1515_v43 }
 0xf0e   :  { %v1517_v47 = vmul.f32 %v1873_v33, %v1516_v44 }
 0xf10   :  { %v1521_v51 = vsel %vm1520_vm12, %v1873_v33, %v1517_v47 }
 0xf11   :  { %v1507_v26 = vpop.xlane.xlu2 %1506  ;;  %v1532_v48 = vmul.f32 %v1521_v51, %v1498_v23 }
 0xf12   :  { %v1509_v37 = vmul.f32 %v1507_v26, %v2290_v55 }
 0xf13   :  { %v1537_v58 = vmul.f32 %v1791_v53, %v1532_v48 }
 0xf14   :  { %v1511_v41 = vadd.f32 1e-05, %v1509_v37 }
 0xf15   :  { %v1542_v59 = vadd.f32 %v1792_v57, %v1537_v58 }
 0xf16   :  { %1874 = vrsqrt.f32 %v1511_v41  ;;  %vm1528_vm14 = vweird.f32 %v1511_v41 }
 0xf1c   :  { %v1875_v45 = vpop.eup %1874 }
 0xf1d   :  { %v1523_v42 = vmul.f32 %v1875_v45, %v1511_v41  ;;  %vm1529_vm13 = vweird.f32 %v1875_v45 }
 0xf1e   :  { %vm1530_vm15 = vmor %vm1528_vm14, %vm1529_vm13 }
 0xf1f   :  { %v1524_v49 = vmul.f32 %v1875_v45, %v1523_v42 }
 0xf21   :  { %v1525_v50 = vmul.f32 0.5, %v1524_v49 }
 0xf23   :  { %v1526_v52 = vsub.f32 1.5, %v1525_v50 }
 0xf25   :  { %v1527_v55 = vmul.f32 %v1875_v45, %v1526_v52 }
 0xf27   :  { %v1531_v54 = vsel %vm1530_vm15, %v1875_v45, %v1527_v55 }
 0xf28   :  { %v1533_v4 = vmul.f32 %v1531_v54, %v1499_v39 }
 0xf2a   :  { %v1538_v56 = vmul.f32 %v1791_v53, %v1533_v4 }
 0xf2c   :  { %v1543_v5 = vadd.f32 %v1792_v57, %v1538_v56 }
 0xf2e   :  { %1562 = vmatpush.msra.mxu2 %v1543_v5 }
 0xf30   :  { %1563 = vmatpush.msra.mxu2 %v1542_v59 }
 0xf31   :  { %1713 = vmatmul.msk.f32.vlgmr.msra.gmra.mxu2 %vm204_vm2, %v1544_v60  ;;  %vm1614_vm2 = vcmask 386048  }
 0xfb4   :  { %v1565_v62 = vpop.f32.mrf.mxu2 }
 0xfb5   :  { %1714 = vmatmul.msk.f32.vlgmr.msra.gmra.mxu0 %vm132_vm0, %v1565_v62 }
0x1032   :  { %v1596_v0 = vpop.f32.mrf.mxu0 }
0x1033   :  { %v1597_v1 = vadd.f32 %v1793_v63, %v1596_v0 }
0x1035   :  { %v1600_v2 = vmul.f32 0.5, %v1597_v1 }
0x1037   :  { %v1601_v3 = vmul.f32 1.442695, %v1600_v2 }
0x1039   :  { %1876 = vpow2.f32 %v1601_v3 }
0x103f   :  { %v1877_v6 = vpop.eup %1876 }
0x1040   :  { %1604 = vrot.lane.b32.xlu0 %v1877_v6, %s1994_s2 }
0x10b2   :  { %v1605_v8 = vpop.permute.xlu0 %1604 }
0x10b3   :  { %v1607_v9 = vmul.f32 %v1605_v8, %v1599_v7 }
0x10b5   :  { %v1608_v10 = vadd.f32 %v1607_v9, %v1597_v1 }
0x10b7   :  { %1610 = vrot.lane.b32.xlu2 %v1608_v10, %s2001_s4 }
0x1111   :  { %v1611_v11 = vpop.permute.xlu2 %1610 }
0x1112   :  { %v1613_v12 = vsel %vm132_vm0, %v1597_v1, %v1611_v11 }
0x1113   :  { %1615 = vst.msk [vmem:[%s2599_s18] sm:$0x3] %vm1614_vm2, %v1613_v12 }
0x1114   :  { %1620 = vsyncpa [#allocation3], 1 }
0x1115   :  { %1621 = vsyncpa [#allocation5], 1 }
0x1116   :  { %1622 = vsyncpa [#allocation8], 1 }

</bundles_post_ra>
